<compile_context>
chip_gen: v5e
topology: v5e:2x2
jax: 0.10.0
libtpu: 0.0.40
codegen_flags: <defaults>
</compile_context>

<pallas_src>
import math
import numpy as np
import jax
import jax.numpy as jnp
from jax.experimental import pallas as pl
from jax.experimental.pallas import tpu as pltpu


# ----------------------------------------------------------------------------
# Deterministic constants.  sca_utils.get_gaussian_kernel(sd=1.5) is separable:
# outer(g, g) / sum(outer) == outer(g/g.sum(), g/g.sum()).
# ----------------------------------------------------------------------------
def _gaussian_1d(sd=1.5):
    ksz = int(4 * sd + 1)                       # 7
    assert ksz % 2 == 1
    k = np.arange(-(ksz - 1) / 2.0, (ksz + 1) / 2.0)
    g = np.exp(-(k ** 2) / (2.0 * sd ** 2))
    return (g / g.sum()).astype(np.float64), ksz


GAUSS_1D, KSZ = _gaussian_1d(1.5)
BI = 5                    # boundary crop used inside match_colors
COLOR_THRESH = 20.0       # err threshold (on 255-scaled values)
VALID_UP_THRESH = 0.9     # threshold after bilinear upsample of the valid mask


def _round_up(x, m):
    return ((x + m - 1) // m) * m


def _blur_crop_matrix(size, crop):
    """1-D matrix implementing reflect-pad + 7-tap Gaussian blur + [crop:-crop]
       (matches sca_utils.apply_kernel: F.pad(mode='reflect') + depthwise conv)."""
    pad = KSZ // 2
    M = np.zeros((size, size), dtype=np.float64)
    for y in range(size):
        for t in range(KSZ):
            p = y - pad + t
            if p < 0:
                p = -p                          # 'reflect' (no edge repeat)
            if p > size - 1:
                p = 2 * (size - 1) - p
            M[y, p] += GAUSS_1D[t]
    if crop > 0:
        M = M[crop:size - crop]
    return M.astype(np.float32)


def _interp_matrix(in_size, out_size):
    """Row-interpolation matrix matching F.interpolate(bilinear, align_corners=False)."""
    src = (np.arange(out_size) + 0.5) * (in_size / out_size) - 0.5
    src = np.clip(src, 0.0, None)
    i0 = np.clip(np.floor(src).astype(np.int64), 0, in_size - 1)
    i1 = np.minimum(i0 + 1, in_size - 1)
    w1 = src - i0
    w0 = 1.0 - w1
    M = np.zeros((out_size, in_size), dtype=np.float32)
    M[np.arange(out_size), i0] += w0.astype(np.float32)
    M[np.arange(out_size), i1] += w1.astype(np.float32)
    return M


# ----------------------------------------------------------------------------
# Pallas kernel: fused per-sample hot path
#   * bilinear-upsample + threshold of the low-res valid mask (MXU, otherwise idle)
#   * 3x3 color transform of pred_warped (VPU FMAs with SMEM scalars)
#   * masked squared-error sum + mask count, accumulated across H strips into a
#     resident lane-dense (Bt, 2, 128) output block
# ----------------------------------------------------------------------------
def _make_kernel(bt):
    def kernel(p_ref, g_ref, vs_ref, mh_ref, mw_ref, c_ref, out_ref):
        bblk = pl.program_id(0)
        si = pl.program_id(1)

        # Output block is resident across the ("arbitrary") strip axis -> it is
        # the accumulator.  Zero it on the first strip.
        @pl.when(si == 0)
        def _():
            out_ref[...] = jnp.zeros_like(out_ref)

        row_sel = jax.lax.broadcasted_iota(jnp.int32, (2, 128), 0) == 0

        for lb in range(bt):                      # static, small
            bg = bblk * bt + lb                   # global sample index (SMEM scalar idx)

            # MXU: valid = threshold(Mh_strip @ valid_small @ Mw^T); K padded to 8s.
            # HIGHEST precision: keeps the f32 bilinear weights exact at the >0.9
            # comparison (K<=8, so the extra passes are free).
            t = jnp.dot(vs_ref[lb], mw_ref[...],
                        preferred_element_type=jnp.float32,
                        precision=jax.lax.Precision.HIGHEST)
            v_up = jnp.dot(mh_ref[...], t,
                           preferred_element_type=jnp.float32,
                           precision=jax.lax.Precision.HIGHEST)
            v = (v_up > VALID_UP_THRESH).astype(jnp.float32)     # (ht, w)

            # 3x3 color transform + squared error.  Channels are loaded from VMEM
            # inside the loop (low vreg live ranges); d^2 is accumulated across
            # channels so there is a single masked cross-lane (XLU) reduction.
            s = None
            for ci in range(3):
                pm = (c_ref[bg, 0 * 3 + ci] * p_ref[lb, 0].astype(jnp.float32)
                      + c_ref[bg, 1 * 3 + ci] * p_ref[lb, 1].astype(jnp.float32)
                      + c_ref[bg, 2 * 3 + ci] * p_ref[lb, 2].astype(jnp.float32))
                d = pm - g_ref[lb, ci].astype(jnp.float32)
                s = d * d if s is None else s + d * d

            sq = jnp.sum(s * v)                   # masked squared-error sum (scalar)
            vc = jnp.sum(v)                       # mask count (scalar)
            upd = jnp.where(row_sel, sq, vc)      # (2, 128): row0=sq, row1=vc
            out_ref[lb] = out_ref[lb] + upd

    return kernel


def color_mse_valid_pallas(pred_warped, gt, valid_small_p, c_mat, up_h, up_w_t,
                           input_dtype=jnp.bfloat16):
    """Per sample b:
         valid      = (up_h @ valid_small_p[b] @ up_w_t) > 0.9      (H, W)
         pred_m[ci] = sum_k c_mat[b, k, ci] * pred_warped[b, k]
         sq_sum[b]  = sum((pred_m - gt[b])^2 * valid)
         v_sum[b]   = sum(valid)
       Returns (sq_sum, v_sum), each of shape (B,)."""
    b, c, h, w = pred_warped.shape
    assert c == 3
    kph = valid_small_p.shape[1]
    kpw = valid_small_p.shape[2]
    assert up_h.shape == (h, kph) and up_w_t.shape == (kpw, w)

    # bf16 staging halves the dominant HBM read traffic (all math stays f32 in
    # the kernel).  Metric-level numerics change from bf16 input quantization.
    p_in = pred_warped.astype(input_dtype)
    g_in = gt.astype(input_dtype)
    c_flat = c_mat.reshape(b, 9).astype(jnp.float32)          # SMEM scalars
    in_bytes = jnp.dtype(input_dtype).itemsize

    # --- tiling ---------------------------------------------------------------
    # H strips keep input double-buffering bounded at production resolutions
    # (fits v7x's 64 MiB VMEM and the default scoped limit everywhere).
    ht = h if (h <= 256 or h % 256 != 0) else 256
    n_strips = h // ht
    # Bt samples per step amortizes the ~0.35us/step fixed overhead; keep >= 2
    # batch blocks so both v7x TensorCores get work, and respect a VMEM budget.
    budget = 24 * 1024 * 1024
    bt = 1
    for cand in range(1, b + 1):
        if b % cand != 0:
            continue
        if b >= 2 and (b // cand) < 2:
            continue
        if 2 * 2 * cand * 3 * ht * w * in_bytes > budget:
            continue
        bt = cand
    nb = b // bt

    # Advisory cost estimate: lets XLA overlap this kernel with surrounding glue.
    flops = int(b * h * w * (6 * 3 + 3 * 3 + 4) + b * 2 * h * w * kpw)
    bytes_accessed = int(b * 2 * 3 * h * w * in_bytes + b * 2 * 128 * 4
                         + b * kph * kpw * 4 + h * kph * 4 + kpw * w * 4 + b * 9 * 4)

    cp_kwargs = dict(dimension_semantics=("parallel", "arbitrary"))
    buf_bytes = 2 * 2 * bt * 3 * ht * w * in_bytes
    if buf_bytes > 30 * 1024 * 1024:
        # whole-image blocks at large resolutions: raise scoped VMEM (v5e/v6e)
        cp_kwargs["vmem_limit_bytes"] = min(int(buf_bytes * 2), 100 * 1024 * 1024)

    out = pl.pallas_call(
        _make_kernel(bt),
        out_shape=jax.ShapeDtypeStruct((b, 2, 128), jnp.float32),
        grid=(nb, n_strips),
        in_specs=[
            pl.BlockSpec((bt, 3, ht, w), lambda bi, si: (bi, 0, si, 0)),
            pl.BlockSpec((bt, 3, ht, w), lambda bi, si: (bi, 0, si, 0)),
            pl.BlockSpec((bt, kph, kpw), lambda bi, si: (bi, 0, 0)),
            pl.BlockSpec((ht, kph), lambda bi, si: (si, 0)),
            pl.BlockSpec((kpw, w), lambda bi, si: (0, 0)),
            pl.BlockSpec(memory_space=pltpu.MemorySpace.SMEM),
        ],
        out_specs=pl.BlockSpec((bt, 2, 128), lambda bi, si: (bi, 0, 0)),
        compiler_params=pltpu.CompilerParams(**cp_kwargs),
        cost_estimate=pl.CostEstimate(flops=flops, transcendentals=0,
                                      bytes_accessed=bytes_accessed),
    )(p_in, g_in, valid_small_p, up_h, up_w_t, c_flat)

    return out[:, 0, 0], out[:, 1, 0]


# ----------------------------------------------------------------------------
# Plain-JAX glue (gather-based warp / bilinear interpolate — no clean Pallas
# equivalent for the data-dependent gathers)
# ----------------------------------------------------------------------------
def warp(feat, flow):
    """Bilinear warp matching the toolkit's warp(): grid_sample, zeros padding,
       align_corners=False. feat: (B,C,H,W), flow: (B,2,H,W) (x, y)."""
    B, C, H, W = feat.shape
    base_x = jnp.broadcast_to(jnp.arange(W, dtype=jnp.float32)[None, :], (H, W))
    base_y = jnp.broadcast_to(jnp.arange(H, dtype=jnp.float32)[:, None], (H, W))

    def warp_one(img, fl):
        x = base_x + fl[0]
        y = base_y + fl[1]
        x0 = jnp.floor(x)
        y0 = jnp.floor(y)
        wx1 = x - x0
        wy1 = y - y0

        def gather(yy, xx):
            inb = (xx >= 0) & (xx <= W - 1) & (yy >= 0) & (yy <= H - 1)
            xi = jnp.clip(xx, 0, W - 1).astype(jnp.int32)
            yi = jnp.clip(yy, 0, H - 1).astype(jnp.int32)
            return img[:, yi, xi] * inb[None].astype(img.dtype)

        out = (gather(y0, x0) * ((1 - wy1) * (1 - wx1))[None]
               + gather(y0, x0 + 1) * ((1 - wy1) * wx1)[None]
               + gather(y0 + 1, x0) * (wy1 * (1 - wx1))[None]
               + gather(y0 + 1, x0 + 1) * (wy1 * wx1)[None])
        return out

    return jax.vmap(warp_one)(feat, flow)


def bilinear_resize(x, out_h, out_w):
    """x: (..., H, W) -> (..., out_h, out_w), PyTorch bilinear (no antialias)."""
    in_h, in_w = x.shape[-2], x.shape[-1]
    Mh = jnp.asarray(_interp_matrix(in_h, out_h))
    Mw = jnp.asarray(_interp_matrix(in_w, out_w))
    y = jnp.einsum('oh,...hw->...ow', Mh, x)
    y = jnp.einsum('pw,...ow->...op', Mw, y)
    return y


def make_alignment_net():
    """Deterministic synthetic alignment net: global-pooled features -> a small
       constant per-image (x, y) flow, broadcast to (B, 2, H, W)."""
    # TODO(synk): the reference uses an external learned alignment CNN; this is a
    # deterministic stand-in with the same interface.
    W_a = jax.random.normal(jax.random.PRNGKey(42), (6, 2), dtype=jnp.float32) * 0.5

    def alignment_net(a, b):
        B, _, H, Wd = a.shape
        feat = jnp.concatenate([a.mean(axis=(2, 3)), b.mean(axis=(2, 3))], axis=1)  # (B, 6)
        flow_vec = jnp.tanh(feat @ W_a) * 3.0                                       # (B, 2)
        return jnp.broadcast_to(flow_vec[:, :, None, None], (B, 2, H, Wd)).astype(a.dtype)

    return alignment_net


# ----------------------------------------------------------------------------
# AlignedL2 / AlignedPSNR forward
# ----------------------------------------------------------------------------
def aligned_psnr(pred, gt, burst_input, alignment_net,
                 sr_factor=4, boundary_ignore=None, max_value=1.0):
    B, C, H, W = pred.shape

    # ---- alignment (per-sample max, mirroring the per-sample forward loop) ----
    pred_max = jnp.max(pred, axis=(1, 2, 3), keepdims=True)
    gt_max = jnp.max(gt, axis=(1, 2, 3), keepdims=True)
    flow = alignment_net(pred / (pred_max + 1e-6), gt / (gt_max + 1e-6))
    flow = jax.lax.stop_gradient(flow)                     # "with torch.no_grad()"

    pred_warped = warp(pred, flow)

    ds_factor = 1.0 / float(2.0 * sr_factor)
    hs, ws = int(H * ds_factor), int(W * ds_factor)
    flow_ds = bilinear_resize(flow, hs, ws) * ds_factor
    burst_0 = burst_input[:, 0][:, jnp.array([0, 1, 3])]   # (B, 3, hs, ws)
    burst_0_warped = warp(burst_0, flow_ds)
    frame_gt_ds = bilinear_resize(gt, hs, ws)

    # ---- sca_utils.match_colors statistics (tiny -> plain XLA) ----
    # 7x7 reflect-padded Gaussian blur + [BI:-BI] crop folded into two matrices.
    Mbh = jnp.asarray(_blur_crop_matrix(hs, BI))           # (hc, hs)
    Mbw = jnp.asarray(_blur_crop_matrix(ws, BI))           # (wc, ws)
    ref_mean = jnp.einsum('yh,bchw,xw->bcyx', Mbh, frame_gt_ds, Mbw)
    q_mean = jnp.einsum('yh,bchw,xw->bcyx', Mbh, burst_0_warped, Mbw)
    hc, wc = ref_mean.shape[-2:]

    ir = ref_mean.reshape(B, 3, hc * wc)
    iq = q_mean.reshape(B, 3, hc * wc)

    # least-squares color transform:  c = (iq iq^T)^{-1} (iq ir^T)   (3x3 per sample)
    gram = jnp.einsum('bkn,bln->bkl', iq, iq)
    cross = jnp.einsum('bkn,bln->bkl', iq, ir)
    c_mat = jnp.linalg.solve(gram, cross)                  # (B, 3, 3), c_mat[b, k, ci]

    q_conv = jnp.einsum('bkn,bkc->bcn', iq, c_mat)
    err = jnp.linalg.norm((q_conv - ir) * 255.0, axis=1).reshape(B, hc, wc)
    valid_small = (err < COLOR_THRESH).astype(jnp.float32)

    # ---- mask-upsample matrices (boundary_ignore folded in as zeroed rows) ----
    mh_np = _interp_matrix(hc, H)                          # (H, hc)
    mw_np = _interp_matrix(wc, W)                          # (W, wc)
    if boundary_ignore is not None:
        bnd = boundary_ignore
        # Zeroed rows/cols make valid == 0 on the boundary, so those pixels drop
        # out of BOTH sq_sum and v_sum -> identical mse to the reference's crop,
        # with no cropped HBM copies and full 128-lane tiles in the kernel.
        mh_np[:bnd] = 0.0
        mh_np[H - bnd:] = 0.0
        mw_np[:bnd] = 0.0
        mw_np[W - bnd:] = 0.0

    kph = _round_up(hc, 8)                                 # contraction dims padded to 8s
    kpw = _round_up(wc, 8)
    up_h = jnp.asarray(np.pad(mh_np, ((0, 0), (0, kph - hc))))      # (H, kph)
    up_w_t = jnp.asarray(np.pad(mw_np, ((0, 0), (0, kpw - wc))).T)  # (kpw, W)
    valid_small_p = jnp.pad(valid_small, ((0, 0), (0, kph - hc), (0, kpw - wc)))

    # ---- fused Pallas hot path: valid upsample+threshold, color transform,
    #      masked MSE reduction ----
    sq_sum, v_sum = color_mse_valid_pallas(pred_warped, gt, valid_small_p,
                                           c_mat, up_h, up_w_t)

    elem_ratio = float(C)           # mse.numel() / valid.numel() (valid has 1 channel)
    eps = 1e-12
    mse = sq_sum / (v_sum * elem_ratio + eps)               # (B,)

    psnr = 20.0 * math.log10(max_value) - 10.0 * jnp.log10(mse)
    return jnp.mean(psnr)                                   # average of per-sample PSNRs


# ----------------------------------------------------------------------------
if __name__ == "__main__":
    B = 2
    H = W = 128                      # super-resolved RGB resolution
    SR_FACTOR = 4
    hs = H // (2 * SR_FACTOR)        # 16: low-res packed-RAW resolution
    ws = W // (2 * SR_FACTOR)
    N_FRAMES = 4

    key = jax.random.PRNGKey(0)
    k1, k2, k3, k4 = jax.random.split(key, 4)
    gt = jax.random.uniform(k1, (B, 3, H, W), dtype=jnp.float32)
    pred = jnp.clip(gt + 0.05 * jax.random.normal(k2, (B, 3, H, W), dtype=jnp.float32),
                    0.0, 1.0)

    # burst: (B, n_frames, 4, hs, ws); frame 0 channels [0, 1, 3] correlated with gt
    burst = jax.random.uniform(k3, (B, N_FRAMES, 4, hs, ws), dtype=jnp.float32)
    gt_small = bilinear_resize(gt, hs, ws)
    burst_rgb = jnp.clip(0.85 * gt_small + 0.05
                         + 0.01 * jax.random.normal(k4, (B, 3, hs, ws), dtype=jnp.float32),
                         0.0, 1.0)
    burst = burst.at[:, 0, 0].set(burst_rgb[:, 0])
    burst = burst.at[:, 0, 1].set(burst_rgb[:, 1])
    burst = burst.at[:, 0, 3].set(burst_rgb[:, 2])

    alignment_net = make_alignment_net()
    fn = jax.jit(lambda p, g, bi: aligned_psnr(p, g, bi, alignment_net,
                                               sr_factor=SR_FACTOR,
                                               boundary_ignore=None,
                                               max_value=1.0))
    psnr = fn(pred, gt, burst)
    jax.block_until_ready(psnr)
    print("KERNEL_OK")
</pallas_src>

<mosaic_0001>
module attributes {stable_mosaic.version = 11 : i64} {
  func.func @kernel(%arg0: i32, %arg1: i32, %arg2: memref<1x3x128x128xbf16, #tpu.memory_space<vmem>>, %arg3: memref<1x3x128x128xbf16, #tpu.memory_space<vmem>>, %arg4: memref<1x8x8xf32, #tpu.memory_space<vmem>>, %arg5: memref<128x8xf32, #tpu.memory_space<vmem>>, %arg6: memref<8x128xf32, #tpu.memory_space<vmem>>, %arg7: memref<2x9xf32, #tpu.memory_space<smem>>, %arg8: memref<1x2x128xf32, #tpu.memory_space<vmem>>) attributes {dimension_semantics = [#tpu.dimension_semantics<parallel>, #tpu.dimension_semantics<arbitrary>], iteration_bounds = array<i64: 2, 1>, scalar_prefetch = 0 : i64, scratch_operands = 0 : i64, tpu.core_type = #tpu.core_type<tc>, window_params = [{transform_indices = @transform_0, window_bounds = array<i64: 1, 3, 128, 128>}, {transform_indices = @transform_1, window_bounds = array<i64: 1, 3, 128, 128>}, {transform_indices = @transform_2, window_bounds = array<i64: 1, 8, 8>}, {transform_indices = @transform_3, window_bounds = array<i64: 128, 8>}, {pipeline_mode = #tpu.pipeline_mode<synchronous>, transform_indices = @transform_4, window_bounds = array<i64: 8, 128>}, {transform_indices = @transform_5, window_bounds = array<i64: 2, 9>}, {transform_indices = @transform_6, window_bounds = array<i64: 1, 2, 128>}]} {
    %c0_i32 = arith.constant 0 : i32
    %0 = arith.cmpi eq, %arg1, %c0_i32 : i32
    %1 = arith.extui %0 : i1 to i32
    %c0_i32_0 = arith.constant 0 : i32
    %2 = arith.cmpi ne, %1, %c0_i32_0 : i32
    scf.if %2 {
      %cst_68 = arith.constant 0.000000e+00 : f32
      %122 = vector.broadcast %cst_68 : f32 to vector<1x2x128xf32>
      %c0_69 = arith.constant 0 : index
      %c0_70 = arith.constant 0 : index
      %c0_71 = arith.constant 0 : index
      %123 = vector.load %arg8[%c0_69, %c0_70, %c0_71] : memref<1x2x128xf32, #tpu.memory_space<vmem>>, vector<1x2x128xf32>
      tpu.vector_store %arg8[%c0_69, %c0_70, %c0_71], %122 {strides = array<i32>} : memref<1x2x128xf32, #tpu.memory_space<vmem>>, vector<1x2x128xf32>,
    } else {
    }
    %3 = tpu.iota {dimensions = array<i32: 0>} : vector<2x128xi32>
    %c0_i32_1 = arith.constant 0 : i32
    %4 = vector.broadcast %c0_i32_1 : i32 to vector<2x128xi32>
    %5 = arith.cmpi eq, %3, %4 : vector<2x128xi32>
    %c1_i32 = arith.constant 1 : i32
    %6 = arith.muli %arg0, %c1_i32 : i32
    %c0_i32_2 = arith.constant 0 : i32
    %7 = arith.addi %6, %c0_i32_2 : i32
    %c0 = arith.constant 0 : index
    %c0_3 = arith.constant 0 : index
    %c0_4 = arith.constant 0 : index
    %8 = vector.load %arg4[%c0, %c0_3, %c0_4] : memref<1x8x8xf32, #tpu.memory_space<vmem>>, vector<1x8x8xf32>
    %9 = vector.shape_cast %8 : vector<1x8x8xf32> to vector<8x8xf32>
    %c0_5 = arith.constant 0 : index
    %c0_6 = arith.constant 0 : index
    %10 = vector.load %arg6[%c0_5, %c0_6] : memref<8x128xf32, #tpu.memory_space<vmem>>, vector<8x128xf32>
    %cst = arith.constant dense<0.000000e+00> : vector<8x128xf32>
    %11 = tpu.matmul %9, %10, %cst {dimension_numbers = #tpu.dot_dimension_numbers<[1], [0], [0], [1], [0, 0, 1, 1], [], []>, precision = #tpu.contract_precision<fp32>} : vector<8x8xf32>, vector<8x128xf32>, vector<8x128xf32> -> vector<8x128xf32>
    %c0_7 = arith.constant 0 : index
    %c0_8 = arith.constant 0 : index
    %12 = vector.load %arg5[%c0_7, %c0_8] : memref<128x8xf32, #tpu.memory_space<vmem>>, vector<128x8xf32>
    %cst_9 = arith.constant dense<0.000000e+00> : vector<128x128xf32>
    %13 = tpu.matmul %12, %11, %cst_9 {dimension_numbers = #tpu.dot_dimension_numbers<[1], [0], [0], [1], [0, 0, 1, 1], [], []>, precision = #tpu.contract_precision<fp32>} : vector<128x8xf32>, vector<8x128xf32>, vector<128x128xf32> -> vector<128x128xf32>
    %cst_10 = arith.constant 0.899999976 : f32
    %14 = vector.broadcast %cst_10 : f32 to vector<128x128xf32>
    %15 = arith.cmpf ogt, %13, %14 : vector<128x128xf32>
    %16 = arith.extui %15 : vector<128x128xi1> to vector<128x128xi32>
    %17 = arith.sitofp %16 : vector<128x128xi32> to vector<128x128xf32>
    %18 = arith.index_cast %7 : i32 to index
    %c0_11 = arith.constant 0 : index
    %19 = memref.load %arg7[%18, %c0_11] : memref<2x9xf32, #tpu.memory_space<smem>>
    %c0_12 = arith.constant 0 : index
    %c0_13 = arith.constant 0 : index
    %c0_14 = arith.constant 0 : index
    %c0_15 = arith.constant 0 : index
    %20 = vector.load %arg2[%c0_12, %c0_13, %c0_14, %c0_15] : memref<1x3x128x128xbf16, #tpu.memory_space<vmem>>, vector<1x1x128x128xbf16>
    %21 = vector.shape_cast %20 : vector<1x1x128x128xbf16> to vector<128x128xbf16>
    %22 = arith.extf %21 : vector<128x128xbf16> to vector<128x128xf32>
    %23 = vector.broadcast %19 : f32 to vector<128x128xf32>
    %24 = arith.mulf %23, %22 : vector<128x128xf32>
    %25 = arith.index_cast %7 : i32 to index
    %c3 = arith.constant 3 : index
    %26 = memref.load %arg7[%25, %c3] : memref<2x9xf32, #tpu.memory_space<smem>>
    %c0_16 = arith.constant 0 : index
    %c1 = arith.constant 1 : index
    %c0_17 = arith.constant 0 : index
    %c0_18 = arith.constant 0 : index
    %27 = vector.load %arg2[%c0_16, %c1, %c0_17, %c0_18] : memref<1x3x128x128xbf16, #tpu.memory_space<vmem>>, vector<1x1x128x128xbf16>
    %28 = vector.shape_cast %27 : vector<1x1x128x128xbf16> to vector<128x128xbf16>
    %29 = arith.extf %28 : vector<128x128xbf16> to vector<128x128xf32>
    %30 = vector.broadcast %26 : f32 to vector<128x128xf32>
    %31 = arith.mulf %30, %29 : vector<128x128xf32>
    %32 = arith.addf %24, %31 : vector<128x128xf32>
    %33 = arith.index_cast %7 : i32 to index
    %c6 = arith.constant 6 : index
    %34 = memref.load %arg7[%33, %c6] : memref<2x9xf32, #tpu.memory_space<smem>>
    %c0_19 = arith.constant 0 : index
    %c2 = arith.constant 2 : index
    %c0_20 = arith.constant 0 : index
    %c0_21 = arith.constant 0 : index
    %35 = vector.load %arg2[%c0_19, %c2, %c0_20, %c0_21] : memref<1x3x128x128xbf16, #tpu.memory_space<vmem>>, vector<1x1x128x128xbf16>
    %36 = vector.shape_cast %35 : vector<1x1x128x128xbf16> to vector<128x128xbf16>
    %37 = arith.extf %36 : vector<128x128xbf16> to vector<128x128xf32>
    %38 = vector.broadcast %34 : f32 to vector<128x128xf32>
    %39 = arith.mulf %38, %37 : vector<128x128xf32>
    %40 = arith.addf %32, %39 : vector<128x128xf32>
    %c0_22 = arith.constant 0 : index
    %c0_23 = arith.constant 0 : index
    %c0_24 = arith.constant 0 : index
    %c0_25 = arith.constant 0 : index
    %41 = vector.load %arg3[%c0_22, %c0_23, %c0_24, %c0_25] : memref<1x3x128x128xbf16, #tpu.memory_space<vmem>>, vector<1x1x128x128xbf16>
    %42 = vector.shape_cast %41 : vector<1x1x128x128xbf16> to vector<128x128xbf16>
    %43 = arith.extf %42 : vector<128x128xbf16> to vector<128x128xf32>
    %44 = arith.subf %40, %43 : vector<128x128xf32>
    %45 = arith.mulf %44, %44 : vector<128x128xf32>
    %46 = arith.index_cast %7 : i32 to index
    %c1_26 = arith.constant 1 : index
    %47 = memref.load %arg7[%46, %c1_26] : memref<2x9xf32, #tpu.memory_space<smem>>
    %c0_27 = arith.constant 0 : index
    %c0_28 = arith.constant 0 : index
    %c0_29 = arith.constant 0 : index
    %c0_30 = arith.constant 0 : index
    %48 = vector.load %arg2[%c0_27, %c0_28, %c0_29, %c0_30] : memref<1x3x128x128xbf16, #tpu.memory_space<vmem>>, vector<1x1x128x128xbf16>
    %49 = vector.shape_cast %48 : vector<1x1x128x128xbf16> to vector<128x128xbf16>
    %50 = arith.extf %49 : vector<128x128xbf16> to vector<128x128xf32>
    %51 = vector.broadcast %47 : f32 to vector<128x128xf32>
    %52 = arith.mulf %51, %50 : vector<128x128xf32>
    %53 = arith.index_cast %7 : i32 to index
    %c4 = arith.constant 4 : index
    %54 = memref.load %arg7[%53, %c4] : memref<2x9xf32, #tpu.memory_space<smem>>
    %c0_31 = arith.constant 0 : index
    %c1_32 = arith.constant 1 : index
    %c0_33 = arith.constant 0 : index
    %c0_34 = arith.constant 0 : index
    %55 = vector.load %arg2[%c0_31, %c1_32, %c0_33, %c0_34] : memref<1x3x128x128xbf16, #tpu.memory_space<vmem>>, vector<1x1x128x128xbf16>
    %56 = vector.shape_cast %55 : vector<1x1x128x128xbf16> to vector<128x128xbf16>
    %57 = arith.extf %56 : vector<128x128xbf16> to vector<128x128xf32>
    %58 = vector.broadcast %54 : f32 to vector<128x128xf32>
    %59 = arith.mulf %58, %57 : vector<128x128xf32>
    %60 = arith.addf %52, %59 : vector<128x128xf32>
    %61 = arith.index_cast %7 : i32 to index
    %c7 = arith.constant 7 : index
    %62 = memref.load %arg7[%61, %c7] : memref<2x9xf32, #tpu.memory_space<smem>>
    %c0_35 = arith.constant 0 : index
    %c2_36 = arith.constant 2 : index
    %c0_37 = arith.constant 0 : index
    %c0_38 = arith.constant 0 : index
    %63 = vector.load %arg2[%c0_35, %c2_36, %c0_37, %c0_38] : memref<1x3x128x128xbf16, #tpu.memory_space<vmem>>, vector<1x1x128x128xbf16>
    %64 = vector.shape_cast %63 : vector<1x1x128x128xbf16> to vector<128x128xbf16>
    %65 = arith.extf %64 : vector<128x128xbf16> to vector<128x128xf32>
    %66 = vector.broadcast %62 : f32 to vector<128x128xf32>
    %67 = arith.mulf %66, %65 : vector<128x128xf32>
    %68 = arith.addf %60, %67 : vector<128x128xf32>
    %c0_39 = arith.constant 0 : index
    %c1_40 = arith.constant 1 : index
    %c0_41 = arith.constant 0 : index
    %c0_42 = arith.constant 0 : index
    %69 = vector.load %arg3[%c0_39, %c1_40, %c0_41, %c0_42] : memref<1x3x128x128xbf16, #tpu.memory_space<vmem>>, vector<1x1x128x128xbf16>
    %70 = vector.shape_cast %69 : vector<1x1x128x128xbf16> to vector<128x128xbf16>
    %71 = arith.extf %70 : vector<128x128xbf16> to vector<128x128xf32>
    %72 = arith.subf %68, %71 : vector<128x128xf32>
    %73 = arith.mulf %72, %72 : vector<128x128xf32>
    %74 = arith.addf %45, %73 : vector<128x128xf32>
    %75 = arith.index_cast %7 : i32 to index
    %c2_43 = arith.constant 2 : index
    %76 = memref.load %arg7[%75, %c2_43] : memref<2x9xf32, #tpu.memory_space<smem>>
    %c0_44 = arith.constant 0 : index
    %c0_45 = arith.constant 0 : index
    %c0_46 = arith.constant 0 : index
    %c0_47 = arith.constant 0 : index
    %77 = vector.load %arg2[%c0_44, %c0_45, %c0_46, %c0_47] : memref<1x3x128x128xbf16, #tpu.memory_space<vmem>>, vector<1x1x128x128xbf16>
    %78 = vector.shape_cast %77 : vector<1x1x128x128xbf16> to vector<128x128xbf16>
    %79 = arith.extf %78 : vector<128x128xbf16> to vector<128x128xf32>
    %80 = vector.broadcast %76 : f32 to vector<128x128xf32>
    %81 = arith.mulf %80, %79 : vector<128x128xf32>
    %82 = arith.index_cast %7 : i32 to index
    %c5 = arith.constant 5 : index
    %83 = memref.load %arg7[%82, %c5] : memref<2x9xf32, #tpu.memory_space<smem>>
    %c0_48 = arith.constant 0 : index
    %c1_49 = arith.constant 1 : index
    %c0_50 = arith.constant 0 : index
    %c0_51 = arith.constant 0 : index
    %84 = vector.load %arg2[%c0_48, %c1_49, %c0_50, %c0_51] : memref<1x3x128x128xbf16, #tpu.memory_space<vmem>>, vector<1x1x128x128xbf16>
    %85 = vector.shape_cast %84 : vector<1x1x128x128xbf16> to vector<128x128xbf16>
    %86 = arith.extf %85 : vector<128x128xbf16> to vector<128x128xf32>
    %87 = vector.broadcast %83 : f32 to vector<128x128xf32>
    %88 = arith.mulf %87, %86 : vector<128x128xf32>
    %89 = arith.addf %81, %88 : vector<128x128xf32>
    %90 = arith.index_cast %7 : i32 to index
    %c8 = arith.constant 8 : index
    %91 = memref.load %arg7[%90, %c8] : memref<2x9xf32, #tpu.memory_space<smem>>
    %c0_52 = arith.constant 0 : index
    %c2_53 = arith.constant 2 : index
    %c0_54 = arith.constant 0 : index
    %c0_55 = arith.constant 0 : index
    %92 = vector.load %arg2[%c0_52, %c2_53, %c0_54, %c0_55] : memref<1x3x128x128xbf16, #tpu.memory_space<vmem>>, vector<1x1x128x128xbf16>
    %93 = vector.shape_cast %92 : vector<1x1x128x128xbf16> to vector<128x128xbf16>
    %94 = arith.extf %93 : vector<128x128xbf16> to vector<128x128xf32>
    %95 = vector.broadcast %91 : f32 to vector<128x128xf32>
    %96 = arith.mulf %95, %94 : vector<128x128xf32>
    %97 = arith.addf %89, %96 : vector<128x128xf32>
    %c0_56 = arith.constant 0 : index
    %c2_57 = arith.constant 2 : index
    %c0_58 = arith.constant 0 : index
    %c0_59 = arith.constant 0 : index
    %98 = vector.load %arg3[%c0_56, %c2_57, %c0_58, %c0_59] : memref<1x3x128x128xbf16, #tpu.memory_space<vmem>>, vector<1x1x128x128xbf16>
    %99 = vector.shape_cast %98 : vector<1x1x128x128xbf16> to vector<128x128xbf16>
    %100 = arith.extf %99 : vector<128x128xbf16> to vector<128x128xf32>
    %101 = arith.subf %97, %100 : vector<128x128xf32>
    %102 = arith.mulf %101, %101 : vector<128x128xf32>
    %103 = arith.addf %74, %102 : vector<128x128xf32>
    %104 = arith.mulf %103, %17 : vector<128x128xf32>
    %105 = vector.shape_cast %104 : vector<128x128xf32> to vector<1x128x128xf32>
    %cst_60 = arith.constant dense<0.000000e+00> : vector<1xf32>
    %106 = vector.multi_reduction <add>, %105, %cst_60 [1, 2] : vector<1x128x128xf32> to vector<1xf32>
    %107 = vector.shape_cast %106 : vector<1xf32> to vector<1x1x1xf32>
    %108 = vector.extract %107[0, 0, 0] : f32 from vector<1x1x1xf32>
    %109 = vector.shape_cast %17 : vector<128x128xf32> to vector<1x128x128xf32>
    %cst_61 = arith.constant dense<0.000000e+00> : vector<1xf32>
    %110 = vector.multi_reduction <add>, %109, %cst_61 [1, 2] : vector<1x128x128xf32> to vector<1xf32>
    %111 = vector.shape_cast %110 : vector<1xf32> to vector<1x1x1xf32>
    %112 = vector.extract %111[0, 0, 0] : f32 from vector<1x1x1xf32>
    %113 = vector.broadcast %108 : f32 to vector<2x128xf32>
    %114 = vector.broadcast %112 : f32 to vector<2x128xf32>
    %115 = arith.select %5, %113, %114 : vector<2x128xi1>, vector<2x128xf32>
    %c0_62 = arith.constant 0 : index
    %c0_63 = arith.constant 0 : index
    %c0_64 = arith.constant 0 : index
    %116 = vector.load %arg8[%c0_62, %c0_63, %c0_64] : memref<1x2x128xf32, #tpu.memory_space<vmem>>, vector<1x2x128xf32>
    %117 = vector.shape_cast %116 : vector<1x2x128xf32> to vector<2x128xf32>
    %118 = arith.addf %117, %115 : vector<2x128xf32>
    %c0_65 = arith.constant 0 : index
    %c0_66 = arith.constant 0 : index
    %c0_67 = arith.constant 0 : index
    %119 = vector.load %arg8[%c0_65, %c0_66, %c0_67] : memref<1x2x128xf32, #tpu.memory_space<vmem>>, vector<1x2x128xf32>
    %120 = vector.shape_cast %119 : vector<1x2x128xf32> to vector<2x128xf32>
    %121 = vector.shape_cast %118 : vector<2x128xf32> to vector<1x2x128xf32>
    tpu.vector_store %arg8[%c0_65, %c0_66, %c0_67], %121 {strides = array<i32>} : memref<1x2x128xf32, #tpu.memory_space<vmem>>, vector<1x2x128xf32>,
    return
  }
  func.func @transform_0(%arg0: i32, %arg1: i32) -> (i32, i32, i32, i32) {
    %c0_i32 = arith.constant 0 : i32
    %c0_i32_0 = arith.constant 0 : i32
    %c0_i32_1 = arith.constant 0 : i32
    return %arg0, %c0_i32, %arg1, %c0_i32_0 : i32, i32, i32, i32
  }
  func.func @transform_1(%arg0: i32, %arg1: i32) -> (i32, i32, i32, i32) {
    %c0_i32 = arith.constant 0 : i32
    %c0_i32_0 = arith.constant 0 : i32
    %c0_i32_1 = arith.constant 0 : i32
    return %arg0, %c0_i32, %arg1, %c0_i32_0 : i32, i32, i32, i32
  }
  func.func @transform_2(%arg0: i32, %arg1: i32) -> (i32, i32, i32) {
    %c0_i32 = arith.constant 0 : i32
    %c0_i32_0 = arith.constant 0 : i32
    %c0_i32_1 = arith.constant 0 : i32
    return %arg0, %c0_i32, %c0_i32_0 : i32, i32, i32
  }
  func.func @transform_3(%arg0: i32, %arg1: i32) -> (i32, i32) {
    %c0_i32 = arith.constant 0 : i32
    %c0_i32_0 = arith.constant 0 : i32
    return %arg1, %c0_i32 : i32, i32
  }
  func.func @transform_4(%arg0: i32, %arg1: i32) -> (i32, i32) {
    %c0_i32 = arith.constant 0 : i32
    %c0_i32_0 = arith.constant 0 : i32
    %c0_i32_1 = arith.constant 0 : i32
    return %c0_i32, %c0_i32_0 : i32, i32
  }
  func.func @transform_5(%arg0: i32, %arg1: i32) -> (i32, i32) {
    %c0_i32 = arith.constant 0 : i32
    %c0_i32_0 = arith.constant 0 : i32
    %c0_i32_1 = arith.constant 0 : i32
    return %c0_i32, %c0_i32_0 : i32, i32
  }
  func.func @transform_6(%arg0: i32, %arg1: i32) -> (i32, i32, i32) {
    %c0_i32 = arith.constant 0 : i32
    %c0_i32_0 = arith.constant 0 : i32
    %c0_i32_1 = arith.constant 0 : i32
    return %arg0, %c0_i32, %c0_i32_0 : i32, i32, i32
  }
}

</mosaic_0001>

<bundles_post_ra>
// kernel: custom-call.8
= control target key start
LH: loop header
LB: loop body
LE: loop exit
PB: predicated region body
PF: predicated region fallthrough
CT: control target
= control target key end

     0   :  { %5 = vsyncpa [#allocation6], 0  ;;  %s911_s0 = inlined_call_operand.vmem [shape: f32[2,3,3], index: 0, kind: input, shape index: {}]   ;;  %s912_s1 = inlined_call_operand.vmem [shape: f32[2,3,3], index: 1, kind: output, shape index: {0}]   ;;  %s913_s2 = inlined_call_operand.hbm [shape: s32[2,3], index: 2, kind: output, shape index: {1}]   ;;  %s914_s3 = inlined_call_operand.vmem [shape: s32[2,3], index: 3, kind: output, shape index: {2}]  }
   0x1   :  { %7 = vsyncpa [#allocation6 + $0x1], 0  ;;  %s735_s12 = smov 0   ;;  %s737_s13 = smov 0  }
   0x2   :  { %s739_s14 = smov 0   ;;  %s741_s15 = smov 0  }
   0x3 LB: > { %s756_s16 = sadd.s32 4294967295, %s708_s15   ;;  %s571_s17 = sadd.s32 4294967294, %s708_s15   ;;  %s708_s15 = sphi %s741_s15, %s920_s15   ;;  %s704_s14 = sphi %s739_s14, %s919_s14   ;;  %s700_s13 = sphi %s737_s13, %s918_s13   ;;  %s696_s12 = sphi %s735_s12, %s917_s12  }
   0x4   : > { %s760_s18 = sadd.s32 1, %s708_s15   ;;  %s17_s19 = sshrl.u32 %s708_s15, 3 }
   0x5   : > { %s18_s20 = sshrl.u32 %s760_s18, 3  ;;  %s22_s21 = sadd.s32 1, %s704_s14 }
   0x6   : > { %s19_s22 = ssub.s32 %s17_s19, %s18_s20  ;;  %p32_p0 = scmp.ne.s32.totalorder %s704_s14, %s700_s13 }
   0x7   : > { %p20_p1 = scmp.eq.s32.totalorder %s19_s22, 0  ;;  %p33_p2 = scmp.eq.s32.totalorder %s756_s16, 1 }
   0x8   : > { %p38_p3 = scmp.ne.s32.totalorder %s700_s13, %s696_s12  ;;  %p39_p4 = scmp.eq.s32.totalorder %s571_s17, 1 }
   0x9   : > { %s771_s23 = scalar_select %p20_p1, %s704_s14, %s22_s21  }
   0xa   : > { %p773_p5 = por %p33_p2, %p32_p0  ;;  %p777_p6 = por %p39_p4, %p38_p3 }
   0xb   : > { %p573_p7 = scmp.ge.s32.totalorder %s708_s15, 2 }
   0xc   : > { %s85_s26 = sand.u32 (!%p573_p7), 1, %s708_s15   ;;  %s575_s27 = sshll.u32 (!%p573_p7), %s708_s15, 2 }
   0xd   : > { %83 = sbr.rel (%p573_p7) target bundleno = 20 (0x14), region = 16  ;;  %s574_s28 = sshll.u32 (!%p573_p7), %s85_s26, 2 }
   0xe   : > { %s89_s4 = scalar_lea.vmem (!%p573_p7), %s911_s0, %s575_s27  ;;  %s87_s5 = scalar_lea.vmem (!%p573_p7), [#allocation1], %s574_s28 }
  0x12   : > { %v106_v0 = vld [vmem:[%s89_s4] sm:$0xf] }
  0x13   : > { %107 = vst [vmem:[%s87_s5] sm:$0xf] %v106_v0 }
  0x14 PF: > { %p576_p8 = scmp.ge.s32.totalorder %s708_s15, 1  ;;  %p124_p9 = scmp.lt.s32.totalorder %s708_s15, 3 }
  0x16   : > { %p125_p10 = pnand %p576_p8, %p124_p9 }
  0x18   : > { %128 = sbr.rel (%p125_p10) target bundleno = 484 (0x1e4), region = 50 }
  0x1d   : > { %s135_s6 = sand.u32 1, %s756_s16   ;;  %s146_s7 = sand.u32 1, %s700_s13   ;;  %v168_v1 = vlaneseq  ;;  %v714_v4 = vmov 0  }
  0x1e   : > { %s793_s8 = sshll.u32 %s135_s6, 2  ;;  %s797_s9 = sshll.u32 %s146_s7, 1 }
  0x1f   : > { %v800_v2 = vshrl.u32 %v168_v1, 7  ;;  %s137_s10 = scalar_lea.vmem [#allocation1], %s793_s8  ;;  %s163_s11 = sand.u32 7, %s756_s16  }
  0x20   : > { %v157_v3 = vld [vmem:[%s137_s10] sm:$0xf]  ;;  %s805_s17 = scalar_lea.vmem [#allocation4], %s163_s11  ;;  %s141_s19 = scalar_lea.vmem [#allocation3], %s793_s8 }
  0x21   : > { %158 = vst [vmem:[#allocation0] sm:$0xf] %v157_v3  ;;  %s148_s20 = scalar_lea.vmem [#allocation5], %s797_s9  ;;  %s154_s21 = scalar_lea.vmem [#allocation8], %s797_s9 }
  0x22   : > { %172 = vst [vmem:[#allocation9] sm:$0xff] %v800_v2  ;;  %s811_s22 = scalar_lea.vmem [#allocation7], %s163_s11  ;;  %s813_s26 = smov 0  }
  0x23   : > { %167 = vst [vmem:[%s805_s17] sm:$0x1] %v714_v4 }
  0x28   : > { %v161_v5 = vld [vmem:[#allocation0] sm:$0xff] }
  0x29   : > { %162 = vst [vmem:[#allocation2] sm:$0xff] %v161_v5 }
  0x2a LB: >> { %vm188_vm0 = vcmp.lt.s32.totalorder %v800_v2, 3  ;;  %v820_v8 = vstv %s712_s26  ;;  %s229_s27 = ssub.s32 128, %s712_s26  ;;  %v235_v39 = vand.u32 127, %v168_v1  ;;  %s241_s28 = scalar_lea.vmem [#allocation2], %s712_s26  ;;  %v238_v42 = vld [vmem:[%s805_s17] ss:$0 sm:$0xff]  ;;  %s712_s26 = sphi %s813_s26, %s178_s26  }
  0x2b   : >> { %vm187_vm1 = vcmp.ge.s32.totalorder %v800_v2, %v820_v8  ;;  %s247_s4 = scalar_lea.vmem [#allocation9], %s712_s26  ;;  %vm267_vm14 = vcmp.gt.s32.totalorder %v800_v2, %v820_v8  ;;  %s178_s26 = sadd.s32 1, %s712_s26  }
  0x2c   : >> { %vm189_vm3 = vmand %vm187_vm1, %vm188_vm0  ;;  %vm236_vm12 = vcmp.eq.s32.totalorder %v235_v39, %v820_v8  ;;  %v249_v44 = vld [vmem:[%s247_s4] ss:$0 sm:$0xff]  ;;  %p175_p11 = scmp.ge.s32.totalorder %s178_s26, 3  }
  0x2d   : > { %s409_s6 = sshrl.u32 (%p175_p11), %s756_s16, 3  ;;  %s415_s26 = sshll.u32 (%p175_p11), %s148_s20, 4  ;;  %s416_s26 = int_to_ptr.vmem [resolvable:$true] %s415_s26 }
  0x2e   : > { %s852_s10 = sshll.u32 (%p175_p11), %s409_s6, 1  ;;  %s363_s6 = scalar_lea.sflag (%p175_p11), [#allocation6], %s146_s7 }
  0x30   : >> { %v183_v6 = vld [vmem:[#allocation2] sm:$0xff]  ;;  %v243_v40 = vld [vmem:[%s241_s28] ss:$0 sm:$0xff] }
  0x31   : >> { %v184_v7 = vand.u32 2147483647, %v183_v6 }
  0x33   : >> { %vm581_vm2 = vcmp.gt.f32.partialorder %v184_v7, -inf }
  0x34   : >> { %vm191_vm4 = vmand %vm189_vm3, %vm581_vm2 }
  0x35   : >> { %v192_v9 = vsel %vm191_vm4, %v800_v2, %v820_v8  ;;  %v193_v10 = vsel %vm191_vm4, %v184_v7, -inf  ;;  %vm284_vm4 = vmand %vm267_vm14, %vm236_vm12 }
  0x36   : >> { %v194_v11 = vrot.slane %v193_v10, 1  ;;  %v195_v12 = vrot.slane %v192_v9, 1 }
  0x38   : >> { %vm196_vm5 = vcmp.ge.f32.partialorder %v194_v11, %v193_v10  ;;  %v199_v13 = vrot.slane %v194_v11, 1  ;;  %v200_v14 = vrot.slane %v195_v12, 1 }
  0x39   : >> { %v197_v15 = vsel %vm196_vm5, %v194_v11, %v193_v10  ;;  %v198_v16 = vsel %vm196_vm5, %v195_v12, %v192_v9  ;;  %vm259_vm5 = vcmp.gt.s32.totalorder %v235_v39, %v820_v8 }
  0x3a   : >> { %vm201_vm6 = vcmp.ge.f32.partialorder %v199_v13, %v197_v15  ;;  %v204_v17 = vrot.slane %v199_v13, 1  ;;  %v205_v18 = vrot.slane %v200_v14, 1 }
  0x3b   : >> { %v202_v19 = vsel %vm201_vm6, %v199_v13, %v197_v15  ;;  %v203_v20 = vsel %vm201_vm6, %v200_v14, %v198_v16 }
  0x3c   : >> { %vm206_vm7 = vcmp.ge.f32.partialorder %v204_v17, %v202_v19  ;;  %v209_v21 = vrot.slane %v204_v17, 1  ;;  %v210_v22 = vrot.slane %v205_v18, 1 }
  0x3d   : >> { %v207_v23 = vsel %vm206_vm7, %v204_v17, %v202_v19  ;;  %v208_v24 = vsel %vm206_vm7, %v205_v18, %v203_v20 }
  0x3e   : >> { %vm211_vm8 = vcmp.ge.f32.partialorder %v209_v21, %v207_v23  ;;  %v214_v25 = vrot.slane %v209_v21, 1  ;;  %v215_v26 = vrot.slane %v210_v22, 1 }
  0x3f   : >> { %v212_v27 = vsel %vm211_vm8, %v209_v21, %v207_v23  ;;  %v213_v28 = vsel %vm211_vm8, %v210_v22, %v208_v24 }
  0x40   : >> { %vm216_vm9 = vcmp.ge.f32.partialorder %v214_v25, %v212_v27  ;;  %v219_v29 = vrot.slane %v214_v25, 1  ;;  %v220_v30 = vrot.slane %v215_v26, 1 }
  0x41   : >> { %v217_v31 = vsel %vm216_vm9, %v214_v25, %v212_v27  ;;  %v218_v32 = vsel %vm216_vm9, %v215_v26, %v213_v28 }
  0x42   : >> { %vm221_vm10 = vcmp.ge.f32.partialorder %v219_v29, %v217_v31  ;;  %v224_v33 = vrot.slane %v219_v29, 1  ;;  %v225_v34 = vrot.slane %v220_v30, 1 }
  0x43   : >> { %v222_v35 = vsel %vm221_vm10, %v219_v29, %v217_v31  ;;  %v223_v36 = vsel %vm221_vm10, %v220_v30, %v218_v32 }
  0x44   : >> { %vm226_vm11 = vcmp.ge.f32.partialorder %v224_v33, %v222_v35 }
  0x45   : >> { %v228_v37 = vsel %vm226_vm11, %v225_v34, %v223_v36 }
  0x46   : >> { %230 = vrot.lane.b32.xlu0 %v228_v37, %s229_s27 }
  0xb8   : >> { %v231_v38 = vpop.permute.xlu0 %230 }
  0xb9   : >> { %590 = vpush %v231_v38 }
  0xea   : >> { %s591_s29 = spop %590 }
  0xeb   : >> { %v237_v41 = vstv %s591_s29  ;;  %s242_s30 = scalar_lea.vmem [#allocation2], %s591_s29  ;;  %s248_s5 = scalar_lea.vmem [#allocation9], %s591_s29 }
  0xec   : >> { %v244_v43 = vld [vmem:[%s242_s30] ss:$0 sm:$0xff]  ;;  %v239_v46 = vsel %vm236_vm12, %v237_v41, %v238_v42 }
  0xed   : >> { %v250_v45 = vld [vmem:[%s248_s5] ss:$0 sm:$0xff]  ;;  %245 = vst [vmem:[%s242_s30] sm:$0x1] %v243_v40  ;;  %vm253_vm13 = vcmp.ne.f32.partialorder %v244_v43, 0.0  ;;  %v260_v62 = vsel %vm259_vm5, %v244_v43, 0.0 }
  0xee   : >> { %246 = vst [vmem:[%s241_s28] sm:$0x1] %v244_v43  ;;  %vm254_vm15 = vmand %vm236_vm12, %vm253_vm13  ;;  %s413_s28 = scalar_lea.hbm (%p175_p11), %s913_s2, %s852_s10 }
  0xef   : >> { %251 = vst [vmem:[%s248_s5] sm:$0x1] %v249_v44  ;;  %v255_v47 = vsel %vm254_vm15, %v244_v43, 1.0  ;;  %s417_s29 = sshll.u32 (%p175_p11), %s413_s28, 4  ;;  %s418_s29 = int_to_ptr.hbm [resolvable:$true] %s417_s29 }
  0xf0   : >> { %252 = vst [vmem:[%s247_s4] sm:$0x1] %v250_v45  ;;  %v268_v48 = vsel %vm267_vm14, %v255_v47, 1.0  ;;  %s656_s11 = sshra.s32 (%p175_p11), %s418_s29, 4  ;;  %s657_s11 = int_to_ptr.hbm [resolvable:$true] %s656_s11 }
  0xf1   : >> { %640 = vrcp.f32 %v268_v48  ;;  %240 = vst [vmem:[%s805_s17] sm:$0x1] %v239_v46  ;;  %v280_v52 = vand.u32 2147483648, %v268_v48  ;;  %v278_v54 = vand.u32 2147483647, %v268_v48  ;;  %vm274_vm1 = vweird.f32 %v268_v48  ;;  %s585_s17 = sshll.u32 (%p175_p11), %s756_s16, 2  ;;  %s658_s16 = scalar_lea.hbm (%p175_p11), %s657_s11, 2 }
  0xf2   : > { %s372_s5 = scalar_lea.vmem (%p175_p11), %s912_s1, %s585_s17  ;;  %p659_p12 = scmp.ne.s32.totalorder (%p175_p11), %s657_s11, %s658_s16 }
  0xf3   : >> { %v281_v56 = vor.u32 1.1754944e-38, %v280_v52  ;;  %vm279_vm3 = vcmp.eq.f32.partialorder %v278_v54, 8.507059e+37  ;;  %s662_s17 = scalar_lea.hbm (%p175_p11), %s913_s2, 2  ;;  %p663_p1 = scmp.lt.s32.totalorder (%p175_p11), %s657_s11, %s913_s2 }
  0xf4   : > { %p660_p13 = pnand (%p175_p11), %p659_p12, %p773_p5  ;;  %p664_p2 = scmp.lt.s32.totalorder (%p175_p11), %s662_s17, %s658_s16 }
  0xf5   : >> { %v264_v58 = vld [vmem:[#allocation2] sm:$0xff] }
  0xf6   : > { %p661_p0 = pneg (%p175_p11), %p660_p13  ;;  %p665_p3 = por (%p175_p11), %p664_p2, %p663_p1 }
  0xf7   : >> { %v641_v49 = vpop.eup %640  ;;  %v291_v4 = vld [vmem:[#allocation9] sm:$0xff] (%p175_p11) }
  0xf8   : >> { %v270_v50 = vmul.f32 %v641_v49, %v268_v48  ;;  %vm275_vm0 = vweird.f32 %v641_v49  ;;  %v348_v1 = vld [vmem:[#allocation4] sm:$0x3] (%p175_p11)  ;;  %p666_p4 = pnand (%p175_p11), %p665_p3, %p661_p0 }
  0xf9   : >> { %vm276_vm2 = vmor %vm274_vm1, %vm275_vm0  ;;  %351 = vst [vmem:[%s148_s20] sm:$0x3] (%p175_p11), %v348_v1 }
  0xfa   : >> { %v271_v51 = vsub.f32 1.0, %v270_v50 }
  0xfc   : >> { %v272_v53 = vmul.f32 %v641_v49, %v271_v51 }
  0xfe   : >> { %v273_v55 = vadd.f32 %v641_v49, %v272_v53 }
 0x100   : >> { %v277_v57 = vsel %vm276_vm2, %v641_v49, %v273_v55 }
 0x101   : >> { %v282_v59 = vsel %vm279_vm3, %v281_v56, %v277_v57 }
 0x102   : >> { %v283_v60 = vmul.f32 %v282_v59, %v264_v58 }
 0x104   : >> { %v285_v61 = vsel %vm284_vm4, %v283_v60, 0.0 }
 0x105   : >> { %286 = vadd.xlane.f32.xlu0 %v285_v61 }
 0x12e   : > { %307 = vxpose.xlu0.b32.start.end [1/1] (short) (narrow) (%p175_p11), %v291_v4, 8 }
 0x178   : >> { %v287_v63 = vpop.xlane.xlu0 %286 }
 0x179   : >> { %v288_v0 = vmul.f32 %v287_v63, %v260_v62  ;;  %177 = sbr.rel (!%p175_p11) target bundleno = 42 (0x2a), region = 202 }
 0x17b   : >> { %v289_v3 = vsub.f32 %v283_v60, %v288_v0 }
 0x17d   : >> { %290 = vst [vmem:[#allocation2] sm:$0xff] %v289_v3 }
 0x184   : > { %v342_v5 = vld [vmem:[#allocation2] sm:$0xf] }
 0x185   : > { %345 = vst [vmem:[%s141_s19] sm:$0xf] %v342_v5 }
 0x18c   : > { %v389_v2 = vld [vmem:[%s141_s19] sm:$0xf] }
 0x18d   : > { %390 = vst [vmem:[%s372_s5] sm:$0xf] %v389_v2 }
 0x18e   : > { %669 = shalt.err (!%p666_p4)
}
 0x18f   : > { %592 = dma.vmem_to_hbm [thread:$0]  (%p773_p5), %s416_s26, 32, %s418_s29, %s363_s6  }
 0x190   : > { %s426_s19 = scalar_lea.vmem (%p773_p5), %s914_s3, %s852_s10 }
 0x1d2   : > { %v323_v6 = vpop.trf.xlu0 }
 0x1d3   : > { %339 = vst [vmem:[%s811_s22] sm:$0x1] %v323_v6 }
 0x1d7   : > { %423 = sbr.rel (!%p773_p5) target bundleno = 484 (0x1e4), region = 96 }
 0x1da   : > { %v354_v7 = vld [vmem:[#allocation7] sm:$0x3] }
 0x1db   : > { %357 = vst [vmem:[%s154_s21] sm:$0x3] %v354_v7 }
 0x1e2   : > { %v443_v8 = vld [vmem:[%s154_s21] sm:$0x3] }
 0x1e3   : > { %444 = vst [vmem:[%s426_s19] sm:$0x3] %v443_v8 }
 0x1e4 PF: > { %s472_s20 = sand.u32 1, %s696_s12   ;;  %p595_p8 = pnand %p573_p7, %p777_p6 }
 0x1e5   : > { %s473_s24 = scalar_lea.sflag [#allocation6], %s472_s20 }
 0x1e6   : > { %p596_p9 = pneg %p595_p8 }
 0x1e8   : > { %691 = dma.done.wait (%p596_p9), %s473_s24, 32  }
 0x1e9   : > { %693 = vsyncadd (%p596_p9), %s473_s24, 4294967264  ;;  %p10_p5 = scmp.ge.s32.totalorder %s760_s18, 4   ;;  %s917_s12 = smov %s700_s13 }
 0x1ea   : > { %s918_s13 = smov %s704_s14  ;;  %s919_s14 = smov %s771_s23 }
 0x1eb   : > { %s920_s15 = smov %s760_s18  ;;  %12 = sbr.rel (!%p10_p5) target bundleno = 3 (0x3), region = 213 }
 0x1f0   :  { %486 = vsyncpa [#allocation6], 1 }
 0x1f1   :  { %488 = vsyncpa [#allocation6 + $0x1], 1 }

// kernel: custom-call.10
= control target key start
LH: loop header
LB: loop body
LE: loop exit
PB: predicated region body
PF: predicated region fallthrough
CT: control target
= control target key end

     0   :  { %s373_s6 = smov 0   ;;  %s375_s7 = smov 0   ;;  %s422_s0 = inlined_call_operand.vmem [shape: f32[2,1,3,3], index: 0, kind: input, shape index: {}]   ;;  %s423_s1 = inlined_call_operand.vmem [shape: f32[2,1,3,3], index: 1, kind: output, shape index: {}]  }
   0x1   :  { %s377_s8 = smov 0  }
   0x2 LB: > { %s299_s9 = sadd.s32 4294967295, %s360_s8   ;;  %s33_s10 = sadd.s32 1, %s356_s7  ;;  %s360_s8 = sphi %s377_s8, %s7_s8   ;;  %s356_s7 = sphi %s375_s7, %s425_s7   ;;  %s352_s6 = sphi %s373_s6, %s424_s6  }
   0x3   : > { %p35_p0 = scmp.ge.s32.totalorder %s33_s10, 2  ;;  %p301_p1 = scmp.ge.s32.totalorder %s360_s8, 2 }
   0x4   : > { %s49_s11 = sand.u32 (!%p301_p1), 1, %s360_s8   ;;  %s303_s12 = sshll.u32 (!%p301_p1), %s356_s7, 2 }
   0x5   : > { %s427_s10 = smov (%p35_p0, %s33_s10), 0  ;;  %47 = sbr.rel (%p301_p1) target bundleno = 12 (0xc), region = 16 }
   0x6   : > { %s302_s13 = sshll.u32 (!%p301_p1), %s49_s11, 2  ;;  %s56_s16 = scalar_lea.vmem (!%p301_p1), %s422_s0, %s303_s12 }
   0x7   : > { %s51_s17 = scalar_lea.vmem (!%p301_p1), [#allocation1], %s302_s13 }
   0xa   : > { %v73_v0 = vld [vmem:[%s56_s16] sm:$0xf] }
   0xb   : > { %74 = vst [vmem:[%s51_s17] sm:$0xf] %v73_v0 }
   0xc PF: > { %p304_p2 = scmp.ge.s32.totalorder %s360_s8, 1  ;;  %p91_p3 = scmp.lt.s32.totalorder %s360_s8, 3 }
   0xe   : > { %p92_p4 = pnand %p304_p2, %p91_p3 }
  0x10   : > { %95 = sbr.rel (%p92_p4) target bundleno = 437 (0x1b5), region = 50 }
  0x15   : > { %s400_s18 = sand.u32 1, %s299_s9   ;;  %v113_v1 = vlaneseq  ;;  %v362_v20 = vmov -1.0   ;;  %s308_s22 = sshll.u32 %s352_s6, 2 }
  0x16   : > { %s305_s19 = sshll.u32 %s400_s18, 2  ;;  %s206_s25 = scalar_lea.vmem %s423_s1, %s308_s22 }
  0x17   : > { %s104_s20 = scalar_lea.vmem [#allocation1], %s305_s19  ;;  %v114_v3 = vand.u32 127, %v113_v1  ;;  %v117_v4 = vshrl.u32 %v113_v1, 7  ;;  %s108_s21 = scalar_lea.vmem [#allocation3], %s305_s19 }
  0x18   : > { %v111_v2 = vld [vmem:[%s104_s20] sm:$0xf] }
  0x19   : > { %112 = vst [vmem:[#allocation0] sm:$0xf] %v111_v2  ;;  %vm119_vm0 = vcmp.eq.s32.totalorder %v117_v4, %v114_v3  ;;  %vm115_vm1 = vcmp.lt.s32.totalorder %v114_v3, 3  ;;  %vm124_vm2 = vcmp.ge.s32.totalorder %v117_v4, %v114_v3  ;;  %vm151_vm8 = vcmp.eq.s32.totalorder %v114_v3, 0 }
  0x1a   : > { %vm125_vm3 = vmand %vm124_vm2, %vm115_vm1  ;;  %vm148_vm9 = vcmp.eq.s32.totalorder %v114_v3, %v117_v4  ;;  %v152_v21 = vsel %vm151_vm8, 1.0, %v362_v20  ;;  %vm159_vm10 = vcmp.eq.s32.totalorder %v114_v3, 1  ;;  %vm169_vm11 = vcmp.eq.s32.totalorder %v114_v3, 2 }
  0x1b   : > { %v153_v22 = vsel %vm148_vm9, %v152_v21, 0.0 }
  0x20   : > { %v120_v5 = vld [vmem:[#allocation0] sm:$0xff] }
  0x21   : > { %v121_v6 = vsel %vm119_vm0, %v120_v5, 0.0  ;;  %v126_v15 = vsel %vm125_vm3, %v120_v5, 0.0 }
  0x22   : > { %122 = vadd.xlane.f32.xlu0 %v121_v6 }
  0x95   : > { %v123_v7 = vpop.xlane.xlu0 %122 }
  0x96   : > { %336 = vrcp.f32 %v123_v7  ;;  %v138_v11 = vand.u32 2147483648, %v123_v7  ;;  %v136_v13 = vand.u32 2147483647, %v123_v7  ;;  %vm132_vm5 = vweird.f32 %v123_v7 }
  0x98   : > { %v139_v16 = vor.u32 1.1754944e-38, %v138_v11  ;;  %vm137_vm7 = vcmp.eq.f32.partialorder %v136_v13, 8.507059e+37 }
  0x9c   : > { %v337_v8 = vpop.eup %336 }
  0x9d   : > { %v128_v9 = vmul.f32 %v337_v8, %v123_v7  ;;  %vm133_vm4 = vweird.f32 %v337_v8 }
  0x9e   : > { %vm134_vm6 = vmor %vm132_vm5, %vm133_vm4 }
  0x9f   : > { %v129_v10 = vsub.f32 1.0, %v128_v9 }
  0xa1   : > { %v130_v12 = vmul.f32 %v337_v8, %v129_v10 }
  0xa3   : > { %v131_v14 = vadd.f32 %v337_v8, %v130_v12 }
  0xa5   : > { %v135_v17 = vsel %vm134_vm6, %v337_v8, %v131_v14 }
  0xa6   : > { %v140_v18 = vsel %vm137_vm7, %v139_v16, %v135_v17 }
  0xa7   : > { %v141_v19 = vmul.f32 %v140_v18, %v126_v15 }
  0xa9   : > { %142 = vst [vmem:[#allocation4] sm:$0xff] %v141_v19 }
  0xb0   : > { %v155_v23 = vld [vmem:[#allocation4 + $0x1] ss:$0 sm:$0xff]  ;;  %v165_v26 = vld [vmem:[#allocation4 + $0x2] ss:$0 sm:$0xff] }
  0xb1   : > { %v156_v24 = vxor.u32 2147483648, %v155_v23  ;;  %v166_v28 = vxor.u32 2147483648, %v165_v26 }
  0xb3   : > { %v160_v25 = vmul.f32 %v156_v24, %v153_v22 }
  0xb5   : > { %161 = vadd.xlane.f32.xlu0 %v160_v25 }
 0x128   : > { %v162_v27 = vpop.xlane.xlu0 %161 }
 0x129   : > { %v163_v29 = vsel %vm159_vm10, %v162_v27, %v153_v22 }
 0x12a   : > { %v170_v30 = vmul.f32 %v166_v28, %v163_v29 }
 0x12c   : > { %171 = vadd.xlane.f32.xlu1 %v170_v30 }
 0x19f   : > { %v172_v31 = vpop.xlane.xlu1 %171 }
 0x1a0   : > { %v173_v32 = vsel %vm169_vm11, %v172_v31, %v163_v29 }
 0x1a1   : > { %v188_v33 = vmul.f32 %v173_v32, %v140_v18 }
 0x1a3   : > { %v190_v34 = vsel %vm132_vm5, %v173_v32, %v188_v33 }
 0x1a4   : > { %191 = vst [vmem:[#allocation2] sm:$0xff] %v190_v34 }
 0x1ab   : > { %v194_v35 = vld [vmem:[#allocation2] sm:$0xf] }
 0x1ac   : > { %197 = vst [vmem:[%s108_s21] sm:$0xf] %v194_v35 }
 0x1b3   : > { %v223_v36 = vld [vmem:[%s108_s21] sm:$0xf] }
 0x1b4   : > { %224 = vst [vmem:[%s206_s25] sm:$0xf] %v223_v36 }
 0x1b5 PF: > { %s7_s8 = sadd.s32 1, %s360_s8   ;;  %s424_s6 = smov %s356_s7 }
 0x1b6   : > { %p4_p5 = scmp.ge.s32.totalorder %s7_s8, 4   ;;  %s425_s7 = smov %s427_s10 }
 0x1b8   :  { %6 = sbr.rel (!%p4_p5) target bundleno = 2 (0x2), region = 112 }

// kernel: custom-call.9
= control target key start
LH: loop header
LB: loop body
LE: loop exit
PB: predicated region body
PF: predicated region fallthrough
CT: control target
= control target key end

     0   :  { %s372_s6 = smov 0   ;;  %s374_s7 = smov 0   ;;  %s421_s0 = inlined_call_operand.vmem [shape: f32[2,1,3,3], index: 0, kind: input, shape index: {}]   ;;  %s422_s1 = inlined_call_operand.vmem [shape: f32[2,1,3,3], index: 1, kind: output, shape index: {}]  }
   0x1   :  { %s376_s8 = smov 0  }
   0x2 LB: > { %s298_s9 = sadd.s32 4294967295, %s359_s8   ;;  %s33_s10 = sadd.s32 1, %s355_s7  ;;  %s359_s8 = sphi %s376_s8, %s7_s8   ;;  %s355_s7 = sphi %s374_s7, %s424_s7   ;;  %s351_s6 = sphi %s372_s6, %s423_s6  }
   0x3   : > { %p35_p0 = scmp.ge.s32.totalorder %s33_s10, 2  ;;  %p300_p1 = scmp.ge.s32.totalorder %s359_s8, 2 }
   0x4   : > { %s49_s11 = sand.u32 (!%p300_p1), 1, %s359_s8   ;;  %s302_s12 = sshll.u32 (!%p300_p1), %s355_s7, 2 }
   0x5   : > { %s426_s10 = smov (%p35_p0, %s33_s10), 0  ;;  %47 = sbr.rel (%p300_p1) target bundleno = 12 (0xc), region = 16 }
   0x6   : > { %s301_s13 = sshll.u32 (!%p300_p1), %s49_s11, 2  ;;  %s56_s16 = scalar_lea.vmem (!%p300_p1), %s421_s0, %s302_s12 }
   0x7   : > { %s51_s17 = scalar_lea.vmem (!%p300_p1), [#allocation1], %s301_s13 }
   0xa   : > { %v73_v0 = vld [vmem:[%s56_s16] sm:$0xf] }
   0xb   : > { %74 = vst [vmem:[%s51_s17] sm:$0xf] %v73_v0 }
   0xc PF: > { %p303_p2 = scmp.ge.s32.totalorder %s359_s8, 1  ;;  %p91_p3 = scmp.lt.s32.totalorder %s359_s8, 3 }
   0xe   : > { %p92_p4 = pnand %p303_p2, %p91_p3 }
  0x10   : > { %95 = sbr.rel (%p92_p4) target bundleno = 437 (0x1b5), region = 50 }
  0x15   : > { %s399_s18 = sand.u32 1, %s298_s9   ;;  %v113_v1 = vlaneseq  ;;  %v361_v20 = vmov -1.0   ;;  %s307_s22 = sshll.u32 %s351_s6, 2 }
  0x16   : > { %s304_s19 = sshll.u32 %s399_s18, 2  ;;  %s205_s25 = scalar_lea.vmem %s422_s1, %s307_s22 }
  0x17   : > { %s104_s20 = scalar_lea.vmem [#allocation1], %s304_s19  ;;  %v114_v3 = vand.u32 127, %v113_v1  ;;  %v117_v4 = vshrl.u32 %v113_v1, 7  ;;  %s108_s21 = scalar_lea.vmem [#allocation3], %s304_s19 }
  0x18   : > { %v111_v2 = vld [vmem:[%s104_s20] sm:$0xf] }
  0x19   : > { %112 = vst [vmem:[#allocation0] sm:$0xf] %v111_v2  ;;  %vm119_vm0 = vcmp.eq.s32.totalorder %v117_v4, %v114_v3  ;;  %vm115_vm1 = vcmp.lt.s32.totalorder %v114_v3, 3  ;;  %vm124_vm2 = vcmp.le.s32.totalorder %v117_v4, %v114_v3  ;;  %vm151_vm8 = vcmp.eq.s32.totalorder %v114_v3, 2 }
  0x1a   : > { %vm125_vm3 = vmand %vm124_vm2, %vm115_vm1  ;;  %vm148_vm9 = vcmp.eq.s32.totalorder %v114_v3, %v117_v4  ;;  %v152_v21 = vsel %vm151_vm8, 1.0, %v361_v20  ;;  %vm159_vm10 = vcmp.eq.s32.totalorder %v114_v3, 1  ;;  %vm168_vm11 = vcmp.eq.s32.totalorder %v114_v3, 0 }
  0x1b   : > { %v153_v22 = vsel %vm148_vm9, %v152_v21, 0.0 }
  0x20   : > { %v120_v5 = vld [vmem:[#allocation0] sm:$0xff] }
  0x21   : > { %v121_v6 = vsel %vm119_vm0, %v120_v5, 0.0  ;;  %v126_v15 = vsel %vm125_vm3, %v120_v5, 0.0 }
  0x22   : > { %122 = vadd.xlane.f32.xlu0 %v121_v6 }
  0x95   : > { %v123_v7 = vpop.xlane.xlu0 %122 }
  0x96   : > { %335 = vrcp.f32 %v123_v7  ;;  %v138_v11 = vand.u32 2147483648, %v123_v7  ;;  %v136_v13 = vand.u32 2147483647, %v123_v7  ;;  %vm132_vm5 = vweird.f32 %v123_v7 }
  0x98   : > { %v139_v16 = vor.u32 1.1754944e-38, %v138_v11  ;;  %vm137_vm7 = vcmp.eq.f32.partialorder %v136_v13, 8.507059e+37 }
  0x9c   : > { %v336_v8 = vpop.eup %335 }
  0x9d   : > { %v128_v9 = vmul.f32 %v336_v8, %v123_v7  ;;  %vm133_vm4 = vweird.f32 %v336_v8 }
  0x9e   : > { %vm134_vm6 = vmor %vm132_vm5, %vm133_vm4 }
  0x9f   : > { %v129_v10 = vsub.f32 1.0, %v128_v9 }
  0xa1   : > { %v130_v12 = vmul.f32 %v336_v8, %v129_v10 }
  0xa3   : > { %v131_v14 = vadd.f32 %v336_v8, %v130_v12 }
  0xa5   : > { %v135_v17 = vsel %vm134_vm6, %v336_v8, %v131_v14 }
  0xa6   : > { %v140_v18 = vsel %vm137_vm7, %v139_v16, %v135_v17 }
  0xa7   : > { %v141_v19 = vmul.f32 %v140_v18, %v126_v15 }
  0xa9   : > { %142 = vst [vmem:[#allocation4] sm:$0xff] %v141_v19 }
  0xb0   : > { %v155_v23 = vld [vmem:[#allocation4 + $0x1] ss:$0 sm:$0xff]  ;;  %v164_v26 = vld [vmem:[#allocation4] ss:$0 sm:$0xff] }
  0xb1   : > { %v156_v24 = vxor.u32 2147483648, %v155_v23  ;;  %v165_v28 = vxor.u32 2147483648, %v164_v26 }
  0xb3   : > { %v160_v25 = vmul.f32 %v156_v24, %v153_v22 }
  0xb5   : > { %161 = vadd.xlane.f32.xlu0 %v160_v25 }
 0x128   : > { %v162_v27 = vpop.xlane.xlu0 %161 }
 0x129   : > { %v163_v29 = vsel %vm159_vm10, %v162_v27, %v153_v22 }
 0x12a   : > { %v169_v30 = vmul.f32 %v165_v28, %v163_v29 }
 0x12c   : > { %170 = vadd.xlane.f32.xlu1 %v169_v30 }
 0x19f   : > { %v171_v31 = vpop.xlane.xlu1 %170 }
 0x1a0   : > { %v172_v32 = vsel %vm168_vm11, %v171_v31, %v163_v29 }
 0x1a1   : > { %v187_v33 = vmul.f32 %v172_v32, %v140_v18 }
 0x1a3   : > { %v189_v34 = vsel %vm132_vm5, %v172_v32, %v187_v33 }
 0x1a4   : > { %190 = vst [vmem:[#allocation2] sm:$0xff] %v189_v34 }
 0x1ab   : > { %v193_v35 = vld [vmem:[#allocation2] sm:$0xf] }
 0x1ac   : > { %196 = vst [vmem:[%s108_s21] sm:$0xf] %v193_v35 }
 0x1b3   : > { %v222_v36 = vld [vmem:[%s108_s21] sm:$0xf] }
 0x1b4   : > { %223 = vst [vmem:[%s205_s25] sm:$0xf] %v222_v36 }
 0x1b5 PF: > { %s7_s8 = sadd.s32 1, %s359_s8   ;;  %s423_s6 = smov %s355_s7 }
 0x1b6   : > { %p4_p5 = scmp.ge.s32.totalorder %s7_s8, 4   ;;  %s424_s7 = smov %s426_s10 }
 0x1b8   :  { %6 = sbr.rel (!%p4_p5) target bundleno = 2 (0x2), region = 111 }

// kernel: _lambda_.1
= control target key start
LH: loop header
LB: loop body
LE: loop exit
PB: predicated region body
PF: predicated region fallthrough
CT: control target
= control target key end

     0   :  { %11 = vsyncpa [#allocation3], 0  ;;  %s2492_s21 = smov 0   ;;  %s2494_s22 = smov 0   ;;  %s3327_s0 = inlined_call_operand.vmem [shape: bf16[2,3,128,128], index: 0, kind: input, shape index: {}]   ;;  %s3328_s1 = inlined_call_operand.vmem [shape: bf16[2,3,128,128], index: 1, kind: input, shape index: {}]   ;;  %s3329_s2 = inlined_call_operand.vmem [shape: f32[2,8,8], index: 2, kind: input, shape index: {}]   ;;  %s3330_s3 = inlined_call_operand.vmem [shape: f32[128,8], index: 3, kind: input, shape index: {}]   ;;  %s3331_s4 = inlined_call_operand.vmem [shape: f32[8,128], index: 4, kind: input, shape index: {}]   ;;  %s3332_s5 = inlined_call_operand.vmem [shape: f32[2,9], index: 5, kind: input, shape index: {}]   ;;  %s3333_s6 = inlined_call_operand.vmem [shape: f32[2,2,128], index: 6, kind: output, shape index: {}]  }
   0x1   :  { %s2496_s23 = smov 0  }
   0x2 LB: > { %s2036_s24 = sadd.s32 4294967295, %s2453_s23   ;;  %s29_s25 = sadd.s32 1, %s2449_s22  ;;  %s2453_s23 = sphi %s2496_s23, %s17_s23   ;;  %s2449_s22 = sphi %s2494_s22, %s3335_s22   ;;  %s2445_s21 = sphi %s2492_s21, %s3334_s21  }
   0x3   : > { %p31_p0 = scmp.ge.s32.totalorder %s29_s25, 2  ;;  %p2038_p1 = scmp.ge.s32.totalorder %s2453_s23, 1 }
   0x4   : > { %p210_p2 = scmp.lt.s32.totalorder %s2453_s23, 3  ;;  %p2384_p4 = scmp.eq.s32.totalorder %s2036_s24, 0 }
   0x5   : > { %s3337_s25 = smov (%p31_p0, %s29_s25), 0  ;;  %s234_s28 = sshll.u32 %s3332_s5, 4  ;;  %s235_s28 = int_to_ptr.vmem [resolvable:$true] %s234_s28 }
   0x6   : > { %p211_p3 = pnand %p2038_p1, %p210_p2  ;;  %s2455_s29 = smov [#allocation2]  }
   0x8   : > { %p2380_p5 = pneg %p211_p3  ;;  %280 = sbr.rel (%p211_p3) target bundleno = 707 (0x2c3), region = 44 }
   0xa   : > { %p2381_p6 = pnand %p2384_p4, %p2380_p5 }
   0xc   : > { %2383 = dma.vmem_to_smem (!%p2381_p6), %s235_s28, 32, %s2455_s29, [#allocation3]  }
   0xd   : > { %2440 = dma.done.wait (%p2384_p4), [#allocation3], 32  }
   0xe   : > { %2442 = vsyncadd (%p2384_p4), [#allocation3], 4294967264 }
   0xf   : > { %287 = sfence }
  0x10   : > { %v376_v0 = vld [vmem:[%s3331_s4] sm:$0xff]  ;;  %p334_p7 = scmp.lt.s32.totalorder %s2445_s21, 1  ;;  %vm377_vm0 = vcmask 64512   ;;  %v534_v14 = vld [vmem:[%s3330_s3 + $0x38] sm:$0xff]  ;;  %v528_v19 = vld [vmem:[%s3330_s3 + $0x8] sm:$0xff]  ;;  %s2817_s30 = sshll.u32 %s2445_s21, 7 }
  0x11   : > { %v396_v1 = vand.u32 4294901760, %v376_v0  ;;  %v527_v13 = vld [vmem:[%s3330_s3] sm:$0xff]  ;;  %v565_v16 = vsel %vm377_vm0, %v534_v14, 0  ;;  %v547_v26 = vsel %vm377_vm0, %v528_v19, 0  ;;  %v529_v35 = vld [vmem:[%s3330_s3 + $0x10] sm:$0xff]  ;;  %v536_v36 = vld [vmem:[%s3330_s3 + $0x48] sm:$0xff] }
  0x12   : > { %s2521_s8 = scalar_select %p334_p7, %s2445_s21, 1  ;;  %v544_v15 = vsel %vm377_vm0, %v527_v13, 0  ;;  %v2538_v18 = vand.u32 4294901760, %v565_v16  ;;  %v535_v21 = vld [vmem:[%s3330_s3 + $0x40] sm:$0xff]  ;;  %v2554_v30 = vand.u32 4294901760, %v547_v26  ;;  %v550_v44 = vsel %vm377_vm0, %v529_v35, 0 }
  0x13   : > { %v423_v2 = vsub.f32 %v376_v0, %v396_v1  ;;  %473 = vmatpush.msra.mxu3 %v396_v1  ;;  %397 = vmatpush.msra.mxu0 %v396_v1  ;;  %v2536_v17 = vand.u32 4294901760, %v544_v15  ;;  %v568_v28 = vsel %vm377_vm0, %v535_v21, 0  ;;  %v571_v46 = vsel %vm377_vm0, %v536_v36, 0  ;;  %v530_v55 = vld [vmem:[%s3330_s3 + $0x18] sm:$0xff]  ;;  %v537_v56 = vld [vmem:[%s3330_s3 + $0x50] sm:$0xff]  ;;  %s1301_s7 = sadd.s32 3, %s2817_s30 }
  0x14   : > { %s2046_s9 = sshll.u32 %s2521_s8, 3  ;;  %v2550_v25 = vsub.f32 %v565_v16, %v2538_v18  ;;  %v2558_v34 = vand.u32 4294901760, %v568_v28  ;;  %v2567_v38 = vsub.f32 %v547_v26, %v2554_v30  ;;  %v2581_v49 = vand.u32 4294901760, %v550_v44  ;;  %s1369_s10 = sadd.s32 6, %s2817_s30 }
  0x15   : > { %450 = vmatpush.msra.mxu2 %v423_v2  ;;  %s356_s12 = scalar_lea.vmem %s3329_s2, %s2046_s9  ;;  %v424_v3 = vand.u32 4294901760, %v423_v2  ;;  %v2547_v24 = vsub.f32 %v544_v15, %v2536_v17  ;;  %v2584_v53 = vand.u32 4294901760, %v571_v46  ;;  %v553_v63 = vsel %vm377_vm0, %v530_v55, 0  ;;  %s2371_s9 = smul.u32 192, %s2521_s8 }
  0x16   : > { %v375_v4 = vld [vmem:[%s356_s12] sm:$0xff]  ;;  %v666_v33 = vand.u32 4294901760, %v2550_v25  ;;  %v2576_v43 = vsub.f32 %v568_v28, %v2558_v34  ;;  %v618_v48 = vand.u32 4294901760, %v2567_v38  ;;  %v2596_v59 = vsub.f32 %v550_v44, %v2581_v49  ;;  %s2829_s21 = sld [smem:[#allocation2 + %s2817_s30]]  ;;  %s1501_s11 = sadd.s32 1, %s2817_s30 }
  0x17   : > { %v379_v5 = vsel %vm377_vm0, %v375_v4, 0  ;;  %v425_v6 = vsub.f32 %v423_v2, %v424_v3  ;;  %499 = vmatpush.msrb.mxu0 %v424_v3  ;;  %v610_v32 = vand.u32 4294901760, %v2547_v24  ;;  %v2602_v61 = vsub.f32 %v571_v46, %v2584_v53  ;;  %v539_v28 = vld [vmem:[%s3330_s3 + $0x60] sm:$0xff]  ;;  %s2835_s12 = sld [smem:[#allocation2 + %s1301_s7]]  ;;  %s1520_s13 = sadd.s32 4, %s2817_s30 }
  0x18   : > { %v398_v7 = vand.u32 4294901760, %v379_v5  ;;  %v667_v42 = vsub.f32 %v2550_v25, %v666_v33  ;;  %v674_v52 = vand.u32 4294901760, %v2576_v43  ;;  %v619_v58 = vsub.f32 %v2567_v38, %v618_v48  ;;  %s2838_s14 = sld [smem:[#allocation2 + %s1369_s10]]  ;;  %s1555_s15 = sadd.s32 7, %s2817_s30 }
  0x19   : > { %v426_v8 = vand.u32 4294901760, %v425_v6  ;;  %v611_v41 = vsub.f32 %v2547_v24, %v610_v32  ;;  %v574_v0 = vsel %vm377_vm0, %v537_v56, 0  ;;  %v626_v3 = vand.u32 4294901760, %v2596_v59  ;;  %s1502_s16 = sld [smem:[#allocation2 + %s1501_s11]]  ;;  %s1671_s17 = sadd.s32 2, %s2817_s30 }
  0x1a   : > { %v399_v9 = vsub.f32 %v379_v5, %v398_v7  ;;  %v668_v51 = vand.u32 4294901760, %v667_v42  ;;  %v675_v60 = vsub.f32 %v2576_v43, %v674_v52  ;;  %v620_v2 = vand.u32 4294901760, %v619_v58  ;;  %s2842_s18 = sld [smem:[#allocation2 + %s1520_s13]]  ;;  %s1690_s19 = sadd.s32 5, %s2817_s30 }
  0x1b   : > { %427 = vmatpush.msra.mxu1 %v426_v8  ;;  %v612_v50 = vand.u32 4294901760, %v611_v41  ;;  %v682_v5 = vand.u32 4294901760, %v2602_v61  ;;  %v2608_v6 = vand.u32 4294901760, %v553_v63  ;;  %s2850_s26 = scalar_lea.vmem %s3327_s0, %s2371_s9  ;;  %s2854_s27 = sld [smem:[#allocation2 + %s1555_s15]] }
  0x1c   : > { %453 = vmatmul.f32.vlgmr.msra.gmra.mxu2 %v399_v9  ;;  %v400_v10 = vand.u32 4294901760, %v399_v9  ;;  %429 = vmatmul.f32.vlgmr.msra.gmra.mxu1 %v398_v7  ;;  %v676_v4 = vand.u32 4294901760, %v675_v60  ;;  %s2856_s28 = sld [smem:[#allocation2 + %s1671_s17]]  ;;  %s1725_s29 = sadd.s32 8, %s2817_s30 }
  0x1d   : > { %521 = vmatpush.msrb.mxu1 %v396_v1  ;;  %v2625_v13 = vsub.f32 %v553_v63, %v2608_v6  ;;  %s2861_s7 = sld [smem:[#allocation2 + %s1690_s19]]  ;;  %s2886_s13 = scalar_lea.vmem %s3328_s1, %s2371_s9 }
  0x1e   : > { %477 = vmatmul.f32.vlgmr.msra.gmra.mxu3 %v400_v10  ;;  %v401_v11 = vsub.f32 %v399_v9, %v400_v10  ;;  %v531_v9 = vld [vmem:[%s3330_s3 + $0x20] sm:$0xff]  ;;  %v538_v10 = vld [vmem:[%s3330_s3 + $0x58] sm:$0xff]  ;;  %s2870_s10 = sld [smem:[#allocation2 + %s1725_s29]]  ;;  %s2047_s9 = sshll.u32 %s2521_s8, 1 }
  0x1f   : > { %v556_v15 = vsel %vm377_vm0, %v531_v9, 0  ;;  %v577_v16 = vsel %vm377_vm0, %v538_v10, 0 }
  0x20   : > { %v402_v12 = vand.u32 4294901760, %v401_v11  ;;  %v627_v11 = vsub.f32 %v2596_v59, %v626_v3  ;;  %v2638_v26 = vand.u32 4294901760, %v577_v16 }
  0x22   : > { %403 = vmatmul.f32.vlgmr.msra.gmra.mxu0 %v402_v12  ;;  %v683_v12 = vsub.f32 %v2602_v61, %v682_v5  ;;  %v628_v19 = vand.u32 4294901760, %v627_v11  ;;  %v2656_v36 = vsub.f32 %v577_v16, %v2638_v26 }
  0x24   : > { %523 = vmatmul.f32.vlgmr.msrb.gmra.mxu1 %v398_v7  ;;  %v684_v21 = vand.u32 4294901760, %v683_v12 }
  0x2a   : > { %501 = vmatmul.f32.vlgmr.msrb.gmra.mxu0 %v398_v7  ;;  %v2610_v7 = vand.u32 4294901760, %v574_v0 }
  0x2c   : > { %v2628_v14 = vsub.f32 %v574_v0, %v2610_v7 }
  0x99   : > { %v430_v20 = vpop.f32.mrf.mxu1 }
  0x9f   : > { %v404_v22 = vpop.f32.mrf.mxu0  ;;  %v454_v23 = vpop.f32.mrf.mxu2 }
  0xa0   : > { %v431_v27 = vadd.f32 %v430_v20, %v404_v22  ;;  %v2634_v20 = vand.u32 4294901760, %v556_v15  ;;  %v634_v22 = vand.u32 4294901760, %v2625_v13 }
  0xa1   : > { %v478_v31 = vpop.f32.mrf.mxu3  ;;  %v524_v40 = vpop.f32.mrf.mxu1 }
  0xa2   : > { %v455_v29 = vadd.f32 %v454_v23, %v431_v27  ;;  %v690_v23 = vand.u32 4294901760, %v2628_v14  ;;  %v532_v27 = vld [vmem:[%s3330_s3 + $0x28] sm:$0xff] }
  0xa4   : > { %v479_v37 = vadd.f32 %v478_v31, %v455_v29  ;;  %v2647_v29 = vsub.f32 %v556_v15, %v2634_v20  ;;  %v635_v31 = vsub.f32 %v2625_v13, %v634_v22  ;;  %v691_v35 = vsub.f32 %v2628_v14, %v690_v23 }
  0xa6   : > { %v636_v42 = vand.u32 4294901760, %v635_v31  ;;  %v692_v44 = vand.u32 4294901760, %v691_v35 }
  0xa7   : > { %v502_v39 = vpop.f32.mrf.mxu0 }
  0xa8   : > { %v503_v45 = vadd.f32 %v502_v39, %v479_v37  ;;  %v559_v37 = vsel %vm377_vm0, %v532_v27, 0  ;;  %v580_v39 = vsel %vm377_vm0, %v539_v28, 0  ;;  %v542_v28 = vld [vmem:[%s3330_s3 + $0x78] sm:$0xff] }
  0xa9   : > { %v2663_v41 = vand.u32 4294901760, %v559_v37  ;;  %v2666_v46 = vand.u32 4294901760, %v580_v39 }
  0xaa   : > { %v525_v47 = vadd.f32 %v524_v40, %v503_v45  ;;  %v642_v40 = vand.u32 4294901760, %v2647_v29  ;;  %v698_v45 = vand.u32 4294901760, %v2656_v36 }
  0xab   : > { %v2684_v56 = vsub.f32 %v580_v39, %v2666_v46  ;;  %v589_v39 = vsel %vm377_vm0, %v542_v28, 0  ;;  %v2897_v28 = vstv %s2842_s18 }
  0xac   : > { %v606_v54 = vand.u32 4294901760, %v525_v47  ;;  %v699_v55 = vsub.f32 %v2656_v36, %v698_v45 }
  0xad   : > { %v706_v0 = vand.u32 4294901760, %v2684_v56 }
  0xae   : > { %v753_v57 = vsub.f32 %v525_v47, %v606_v54  ;;  %607 = vmatpush.msra.mxu0 %v606_v54  ;;  %2369 = vmatpush.msrb.mxu2 %v606_v54  ;;  %v533_v47 = vld [vmem:[%s3330_s3 + $0x30] sm:$0xff]  ;;  %v700_v63 = vand.u32 4294901760, %v699_v55 }
  0xaf   : > { %613 = vmatmul.f32.vlgmr.msra.gmra.mxu0 %v612_v50  ;;  %669 = vmatmul.f32.vlgmr.msrb.gmra.mxu2 %v668_v51  ;;  %v540_v50 = vld [vmem:[%s3330_s3 + $0x68] sm:$0xff]  ;;  %v643_v51 = vsub.f32 %v2647_v29, %v642_v40  ;;  %v707_v9 = vsub.f32 %v2684_v56, %v706_v0 }
  0xb0   : > { %v754_v62 = vand.u32 4294901760, %v753_v57  ;;  %840 = vmatpush.msrb.mxu0 %v753_v57  ;;  %v583_v58 = vsel %vm377_vm0, %v540_v50, 0  ;;  %v2732_v50 = vand.u32 4294901760, %v589_v39 }
  0xb1   : > { %v644_v60 = vand.u32 4294901760, %v643_v51  ;;  %v708_v16 = vand.u32 4294901760, %v707_v9  ;;  %v2879_v9 = vstv %s1502_s16 }
  0xb2   : > { %v755_v1 = vsub.f32 %v753_v57, %v754_v62  ;;  %1054 = vmatpush.msra.mxu2 %v754_v62  ;;  %v562_v57 = vsel %vm377_vm0, %v533_v47, 0  ;;  %v2738_v55 = vsub.f32 %v589_v39, %v2732_v50 }
  0xb4   : > { %v756_v8 = vand.u32 4294901760, %v755_v1  ;;  %v2692_v1 = vand.u32 4294901760, %v562_v57 }
  0xb6   : > { %757 = vmatpush.msra.mxu1 %v756_v8  ;;  %2370 = vmatpush.msrb.mxu3 %v756_v8  ;;  %v2706_v10 = vsub.f32 %v562_v57, %v2692_v1 }
  0xb7   : > { %621 = vmatmul.f32.gmra.mxu0 %v620_v2  ;;  %677 = vmatmul.f32.gmra.mxu2 %v676_v4  ;;  %v2694_v2 = vand.u32 4294901760, %v583_v58  ;;  %v541_v4 = vld [vmem:[%s3330_s3 + $0x70] sm:$0xff] }
  0xb8   : > { %759 = vmatmul.f32.vlgmr.msra.gmra.mxu1 %v2536_v17  ;;  %787 = vmatmul.f32.vlgmr.msrb.gmra.mxu3 %v2538_v18  ;;  %v586_v12 = vsel %vm377_vm0, %v541_v4, 0  ;;  %v2876_v4 = vstv %s2835_s12 }
  0xb9   : > { %938 = vmatpush.msrb.mxu1 %v606_v54  ;;  %1136 = vmatpush.msra.mxu3 %v606_v54  ;;  %v2678_v54 = vsub.f32 %v559_v37, %v2663_v41  ;;  %v2709_v11 = vsub.f32 %v583_v58, %v2694_v2  ;;  %v2716_v27 = vand.u32 4294901760, %v586_v12  ;;  %v730_v58 = vand.u32 4294901760, %v2738_v55 }
  0xbb   : > { %v650_v62 = vand.u32 4294901760, %v2678_v54  ;;  %v2726_v37 = vsub.f32 %v586_v12, %v2716_v27 }
  0xbd   : > { %v651_v8 = vsub.f32 %v2678_v54, %v650_v62  ;;  %v722_v47 = vand.u32 4294901760, %v2726_v37 }
  0xbf   : > { %629 = vmatmul.f32.gmra.mxu0 %v628_v19  ;;  %685 = vmatmul.f32.gmra.mxu2 %v684_v21  ;;  %v652_v15 = vand.u32 4294901760, %v651_v8  ;;  %v658_v19 = vand.u32 4294901760, %v2706_v10  ;;  %v714_v21 = vand.u32 4294901760, %v2709_v11  ;;  %v723_v51 = vsub.f32 %v2726_v37, %v722_v47  ;;  %v2338_v8 = vld [vmem:[%s2850_s26 + $0x80] sm:$0xff]  }
  0xc0   : > { %763 = vmatmul.f32.gmra.mxu1 %v2554_v30  ;;  %791 = vmatmul.f32.gmra.mxu3 %v2558_v34  ;;  %v2197_v12 = vunpack.c.l.bf16 %v2338_v8 }
  0xc1   : > { %v659_v31 = vsub.f32 %v2706_v10, %v658_v19  ;;  %v715_v35 = vsub.f32 %v2709_v11, %v714_v21  ;;  %v724_v57 = vand.u32 4294901760, %v723_v51 }
  0xc7   : > { %637 = vmatmul.f32.gmra.mxu0 %v636_v42  ;;  %693 = vmatmul.f32.gmra.mxu2 %v692_v44  ;;  %v660_v42 = vand.u32 4294901760, %v659_v31  ;;  %v716_v44 = vand.u32 4294901760, %v715_v35  ;;  %v2900_v31 = vstv %s2854_s27 }
  0xc8   : > { %767 = vmatmul.f32.gmra.mxu1 %v2581_v49  ;;  %795 = vmatmul.f32.gmra.mxu3 %v2584_v53  ;;  %v1558_v51 = vmul.f32 %v2197_v12, %v2900_v31 }
  0xcf   : > { %645 = vmatmul.f32.gmra.mxu0 %v644_v60  ;;  %701 = vmatmul.f32.gmra.mxu2 %v700_v63  ;;  %v731_v60 = vsub.f32 %v2738_v55, %v730_v58 }
  0xd0   : > { %771 = vmatmul.f32.gmra.mxu1 %v2608_v6  ;;  %799 = vmatmul.f32.gmra.mxu3 %v2610_v7 }
  0xd1   : > { %v732_v63 = vand.u32 4294901760, %v731_v60  ;;  %v2908_v60 = vld [vmem:[%s2886_s13] sm:$0xff]  }
  0xd7   : > { %653 = vmatmul.f32.gmra.mxu0 %v652_v15  ;;  %709 = vmatmul.f32.gmra.mxu2 %v708_v16 }
  0xd8   : > { %775 = vmatmul.f32.gmra.mxu1 %v2634_v20  ;;  %803 = vmatmul.f32.gmra.mxu3 %v2638_v26 }
  0xdf   : > { %661 = vmatmul.f32.gmra.mxu0 %v660_v42  ;;  %717 = vmatmul.f32.gmra.mxu2 %v716_v44 }
  0xe0   : > { %779 = vmatmul.f32.gmra.mxu1 %v2663_v41  ;;  %807 = vmatmul.f32.gmra.mxu3 %v2666_v46 }
  0xe7   : > { %725 = vmatmul.f32.gmra.mxu2 %v724_v57  ;;  %843 = vmatmul.f32.vlgmr.msrb.gmra.mxu0 %v2547_v24 }
  0xe8   : > { %783 = vmatmul.f32.gmra.mxu1 %v2692_v1  ;;  %811 = vmatmul.f32.gmra.mxu3 %v2694_v2 }
  0xef   : > { %733 = vmatmul.f32.gmra.mxu2 %v732_v63  ;;  %848 = vmatmul.f32.gmra.mxu0 %v2567_v38  ;;  %v2911_v63 = vld [vmem:[%s2886_s13 + $0x40] sm:$0xff]  }
  0xf0   : > { %815 = vmatmul.f32.gmra.mxu3 %v2716_v27  ;;  %942 = vmatmul.f32.vlgmr.msrb.gmra.mxu1 %v610_v32 }
  0xf7   : > { %853 = vmatmul.f32.gmra.mxu0 %v2596_v59  ;;  %1056 = vmatmul.f32.vlgmr.msra.gmra.mxu2 %v2536_v17 }
  0xf8   : > { %819 = vmatmul.f32.gmra.mxu3 %v2732_v50  ;;  %948 = vmatmul.f32.gmra.mxu1 %v618_v48 }
  0xff   : > { %858 = vmatmul.f32.gmra.mxu0 %v2625_v13  ;;  %1060 = vmatmul.f32.gmra.mxu2 %v2554_v30 }
 0x100   : > { %954 = vmatmul.f32.gmra.mxu1 %v626_v3  ;;  %1138 = vmatmul.f32.vlgmr.msra.gmra.mxu3 %v2536_v17 }
 0x107   : > { %863 = vmatmul.f32.gmra.mxu0 %v2647_v29  ;;  %1064 = vmatmul.f32.gmra.mxu2 %v2581_v49 }
 0x108   : > { %960 = vmatmul.f32.gmra.mxu1 %v634_v22  ;;  %1142 = vmatmul.f32.gmra.mxu3 %v2554_v30 }
 0x10f   : > { %868 = vmatmul.f32.gmra.mxu0 %v2678_v54  ;;  %1068 = vmatmul.f32.gmra.mxu2 %v2608_v6  ;;  %v2330_v54 = vld [vmem:[%s2850_s26 + $0x40] sm:$0xff]  }
 0x110   : > { %966 = vmatmul.f32.gmra.mxu1 %v642_v40  ;;  %1146 = vmatmul.f32.gmra.mxu3 %v2581_v49 }
 0x117   : > { %873 = vmatmul.f32.gmra.mxu0 %v2706_v10  ;;  %1072 = vmatmul.f32.gmra.mxu2 %v2634_v20 }
 0x118   : > { %972 = vmatmul.f32.gmra.mxu1 %v650_v62  ;;  %1150 = vmatmul.f32.gmra.mxu3 %v2608_v6  ;;  %v2165_v62 = vunpack.c.l.bf16 %v2330_v54 }
 0x11a   : > { %v1523_v44 = vmul.f32 %v2165_v62, %v2897_v28 }
 0x11f   : > { %878 = vmatmul.f32.gmra.mxu0 %v2550_v25  ;;  %1076 = vmatmul.f32.gmra.mxu2 %v2663_v41 }
 0x120   : > { %978 = vmatmul.f32.gmra.mxu1 %v658_v19  ;;  %1154 = vmatmul.f32.gmra.mxu3 %v2634_v20 }
 0x127   : > { %883 = vmatmul.f32.gmra.mxu0 %v2576_v43  ;;  %1080 = vmatmul.f32.gmra.mxu2 %v2692_v1 }
 0x128   : > { %984 = vmatmul.f32.gmra.mxu1 %v666_v33  ;;  %1158 = vmatmul.f32.gmra.mxu3 %v2663_v41 }
 0x12c   : > { %v614_v17 = vpop.f32.mrf.mxu0 }
 0x12f   : > { %888 = vmatmul.f32.gmra.mxu0 %v2602_v61  ;;  %1084 = vmatmul.f32.gmra.mxu2 %v2538_v18 }
 0x130   : > { %990 = vmatmul.f32.gmra.mxu1 %v674_v52  ;;  %1162 = vmatmul.f32.gmra.mxu3 %v2692_v1  ;;  %v2873_v1 = vstv %s2829_s21 }
 0x132   : > { %v670_v24 = vpop.f32.mrf.mxu2 }
 0x134   : > { %v622_v30 = vpop.f32.mrf.mxu0 }
 0x135   : > { %v760_v32 = vpop.f32.mrf.mxu1 }
 0x136   : > { %v2791_v38 = vadd.f32 %v760_v32, %v614_v17  ;;  %v2914_v17 = vstv %s2856_s28  ;;  %v2229_v32 = vunpack.c.l.bf16 %v2908_v60 }
 0x137   : > { %893 = vmatmul.f32.gmra.mxu0 %v2628_v14  ;;  %1088 = vmatmul.f32.gmra.mxu2 %v2558_v34 }
 0x138   : > { %996 = vmatmul.f32.gmra.mxu1 %v682_v5  ;;  %1166 = vmatmul.f32.gmra.mxu3 %v2538_v18 }
 0x13a   : > { %v678_v25 = vpop.f32.mrf.mxu2 }
 0x13b   : > { %v788_v33 = vpop.f32.mrf.mxu3 }
 0x13c   : > { %v2798_v43 = vadd.f32 %v788_v33, %v670_v24  ;;  %v630_v48 = vpop.f32.mrf.mxu0  ;;  %v2917_v24 = vstv %s2861_s7  ;;  %v2261_v33 = vunpack.c.l.bf16 %v2911_v63 }
 0x13d   : > { %v764_v49 = vpop.f32.mrf.mxu1 }
 0x13e   : > { %v2800_v52 = vadd.f32 %v764_v49, %v622_v30  ;;  %v1693_v49 = vmul.f32 %v2165_v62, %v2917_v24 }
 0x13f   : > { %898 = vmatmul.f32.gmra.mxu0 %v2656_v36  ;;  %1092 = vmatmul.f32.gmra.mxu2 %v2584_v53 }
 0x140   : > { %1002 = vmatmul.f32.gmra.mxu1 %v690_v23  ;;  %1170 = vmatmul.f32.gmra.mxu3 %v2558_v34 }
 0x142   : > { %v686_v59 = vpop.f32.mrf.mxu2 }
 0x143   : > { %v792_v18 = vpop.f32.mrf.mxu3 }
 0x144   : > { %v2807_v61 = vadd.f32 %v792_v18, %v678_v25  ;;  %v638_v3 = vpop.f32.mrf.mxu0  ;;  %v2932_v18 = vld [vmem:[%s2886_s13 + $0x80] sm:$0xff]  }
 0x145   : > { %v768_v5 = vpop.f32.mrf.mxu1 }
 0x146   : > { %v2809_v6 = vadd.f32 %v768_v5, %v630_v48 }
 0x147   : > { %903 = vmatmul.f32.gmra.mxu0 %v2684_v56  ;;  %1096 = vmatmul.f32.gmra.mxu2 %v2610_v7 }
 0x148   : > { %1008 = vmatmul.f32.gmra.mxu1 %v698_v45  ;;  %1174 = vmatmul.f32.gmra.mxu3 %v2584_v53  ;;  %v2132_v45 = vld [vmem:[%s2850_s26] sm:$0xff]  }
 0x149   : > { %v2133_v56 = vunpack.c.l.bf16 %v2132_v45 }
 0x14a   : > { %v694_v13 = vpop.f32.mrf.mxu2 }
 0x14b   : > { %v796_v34 = vpop.f32.mrf.mxu3  ;;  %v1285_v10 = vmul.f32 %v2133_v56, %v2873_v1  ;;  %v1504_v15 = vmul.f32 %v2133_v56, %v2879_v9  ;;  %v1674_v48 = vmul.f32 %v2133_v56, %v2914_v17 }
 0x14c   : > { %v2819_v14 = vadd.f32 %v796_v34, %v686_v59  ;;  %v646_v20 = vpop.f32.mrf.mxu0  ;;  %v2929_v59 = vstv %s2870_s10 }
 0x14d   : > { %v772_v22 = vpop.f32.mrf.mxu1  ;;  %v1539_v25 = vadd.f32 %v1523_v44, %v1504_v15  ;;  %v2230_v44 = vunpack.c.h.bf16 %v2908_v60 }
 0x14e   : > { %v2823_v23 = vadd.f32 %v772_v22, %v638_v3  ;;  %v2134_v22 = vunpack.c.h.bf16 %v2132_v45 }
 0x14f   : > { %908 = vmatmul.f32.gmra.mxu0 %v2709_v11  ;;  %1100 = vmatmul.f32.gmra.mxu2 %v2638_v26  ;;  %v1337_v11 = vmul.f32 %v2165_v62, %v2876_v4  ;;  %v1574_v5 = vadd.f32 %v1558_v51, %v1539_v25  ;;  %v2323_v51 = vld [vmem:[%s2850_s26 + $0x8] sm:$0xff]  }
 0x150   : > { %1014 = vmatmul.f32.gmra.mxu1 %v706_v0  ;;  %1178 = vmatmul.f32.gmra.mxu3 %v2610_v7  ;;  %v1286_v62 = vmul.f32 %v2134_v22, %v2873_v1  ;;  %v1675_v25 = vmul.f32 %v2134_v22, %v2914_v17 }
 0x151   : > { %v1353_v39 = vadd.f32 %v1337_v11, %v1285_v10 }
 0x152   : > { %v702_v53 = vpop.f32.mrf.mxu2 }
 0x153   : > { %v800_v29 = vpop.f32.mrf.mxu3 }
 0x154   : > { %v2852_v7 = vadd.f32 %v800_v29, %v694_v13  ;;  %v654_v36 = vpop.f32.mrf.mxu0  ;;  %v1728_v13 = vmul.f32 %v2197_v12, %v2929_v59  ;;  %v2198_v29 = vunpack.c.h.bf16 %v2338_v8 }
 0x155   : > { %v776_v40 = vpop.f32.mrf.mxu1 }
 0x156   : > { %v2859_v41 = vadd.f32 %v776_v40, %v646_v20  ;;  %v1709_v20 = vadd.f32 %v1693_v49, %v1674_v48 }
 0x157   : > { %913 = vmatmul.f32.gmra.mxu0 %v2726_v37  ;;  %1104 = vmatmul.f32.gmra.mxu2 %v2666_v46 }
 0x158   : > { %1020 = vmatmul.f32.gmra.mxu1 %v714_v21  ;;  %1182 = vmatmul.f32.gmra.mxu3 %v2638_v26  ;;  %v2894_v21 = vstv %s2838_s14  ;;  %v1744_v56 = vadd.f32 %v1728_v13, %v1709_v20  ;;  %v1729_v13 = vmul.f32 %v2198_v29, %v2929_v59  ;;  %s366_s14 = scalar_lea.vmem %s3333_s6, %s2047_s9 }
 0x159   : > { %v1405_v42 = vmul.f32 %v2197_v12, %v2894_v21  ;;  %v1406_v45 = vmul.f32 %v2198_v29, %v2894_v21 }
 0x15a   : > { %v710_v0 = vpop.f32.mrf.mxu2 }
 0x15b   : > { %v804_v26 = vpop.f32.mrf.mxu3  ;;  %v1421_v30 = vadd.f32 %v1405_v42, %v1353_v39  ;;  %v1559_v39 = vmul.f32 %v2198_v29, %v2900_v31  ;;  %v2294_v29 = vunpack.c.h.bf16 %v2932_v18 }
 0x15c   : > { %v2891_v16 = vadd.f32 %v804_v26, %v702_v53  ;;  %v662_v19 = vpop.f32.mrf.mxu0  ;;  %v2166_v53 = vunpack.c.h.bf16 %v2330_v54  ;;  %v1505_v54 = vmul.f32 %v2134_v22, %v2879_v9 }
 0x15d   : > { %v780_v35 = vpop.f32.mrf.mxu1  ;;  %v1469_v3 = vsub.f32 %v1421_v30, %v2229_v32  ;;  %v2331_v30 = vld [vmem:[%s2850_s26 + $0x48] sm:$0xff]   ;;  %v2262_v32 = vunpack.c.h.bf16 %v2911_v63 }
 0x15e   : > { %v2905_v57 = vadd.f32 %v780_v35, %v654_v36  ;;  %v1338_v26 = vmul.f32 %v2166_v53, %v2876_v4  ;;  %v1524_v35 = vmul.f32 %v2166_v53, %v2897_v28  ;;  %v2169_v60 = vunpack.c.l.bf16 %v2331_v30 }
 0x15f   : > { %918 = vmatmul.f32.gmra.mxu0 %v2738_v55  ;;  %1108 = vmatmul.f32.gmra.mxu2 %v2694_v2  ;;  %v1485_v12 = vmul.f32 %v1469_v3, %v1469_v3  ;;  %v2137_v3 = vunpack.c.l.bf16 %v2323_v51 }
 0x160   : > { %1026 = vmatmul.f32.gmra.mxu1 %v722_v47  ;;  %1186 = vmatmul.f32.gmra.mxu3 %v2666_v46  ;;  %v1623_v47 = vsub.f32 %v1574_v5, %v2261_v33  ;;  %v2293_v46 = vunpack.c.l.bf16 %v2932_v18  ;;  %v1354_v8 = vadd.f32 %v1338_v26, %v1286_v62  ;;  %v1694_v33 = vmul.f32 %v2166_v53, %v2917_v24 }
 0x161   : > { %v1287_v53 = vmul.f32 %v2137_v3, %v2873_v1  ;;  %v1339_v62 = vmul.f32 %v2169_v60, %v2876_v4 }
 0x162   : > { %v718_v34 = vpop.f32.mrf.mxu2  ;;  %v1422_v42 = vadd.f32 %v1406_v45, %v1354_v8  ;;  %v1525_v45 = vmul.f32 %v2169_v60, %v2897_v28 }
 0x163   : > { %v808_v37 = vpop.f32.mrf.mxu3 }
 0x164   : > { %v2936_v36 = vadd.f32 %v808_v37, %v710_v0  ;;  %v844_v40 = vpop.f32.mrf.mxu0  ;;  %v1639_v0 = vmul.f32 %v1623_v47, %v1623_v47  ;;  %v1470_v22 = vsub.f32 %v1422_v42, %v2230_v44 }
 0x165   : > { %v784_v10 = vpop.f32.mrf.mxu1  ;;  %v845_v11 = vadd.f32 %v844_v40, %v2791_v38  ;;  %v1793_v38 = vsub.f32 %v1744_v56, %v2293_v46 }
 0x166   : > { %v2943_v15 = vadd.f32 %v784_v10, %v662_v19  ;;  %v1540_v19 = vadd.f32 %v1524_v35, %v1505_v54  ;;  %v1655_v49 = vadd.f32 %v1639_v0, %v1485_v12  ;;  %v2346_v12 = vld [vmem:[%s2886_s13 + $0x8] sm:$0xff]   ;;  %v1355_v0 = vadd.f32 %v1339_v62, %v1287_v53 }
 0x167   : > { %1112 = vmatmul.f32.gmra.mxu2 %v2716_v27  ;;  %v1809_v47 = vmul.f32 %v1793_v38, %v1793_v38  ;;  %v2972_v54 = vld [vmem:[%s2886_s13 + $0x48] sm:$0xff]   ;;  %v2233_v8 = vunpack.c.l.bf16 %v2346_v12  ;;  %v1676_v38 = vmul.f32 %v2137_v3, %v2914_v17  ;;  %v1486_v42 = vmul.f32 %v1470_v22, %v1470_v22 }
 0x168   : > { %1032 = vmatmul.f32.gmra.mxu1 %v730_v58  ;;  %1190 = vmatmul.f32.gmra.mxu3 %v2694_v2  ;;  %v1575_v55 = vadd.f32 %v1559_v39, %v1540_v19  ;;  %v2339_v58 = vld [vmem:[%s2850_s26 + $0x88] sm:$0xff]   ;;  %v1710_v2 = vadd.f32 %v1694_v33, %v1675_v25  ;;  %v2265_v39 = vunpack.c.l.bf16 %v2972_v54 }
 0x169   : > { %v2201_v20 = vunpack.c.l.bf16 %v2339_v58  ;;  %v2202_v53 = vunpack.c.h.bf16 %v2339_v58 }
 0x16a   : > { %v726_v48 = vpop.f32.mrf.mxu2  ;;  %v1624_v56 = vsub.f32 %v1575_v55, %v2262_v32  ;;  %v1695_v32 = vmul.f32 %v2169_v60, %v2917_v24 }
 0x16b   : > { %v812_v5 = vpop.f32.mrf.mxu3  ;;  %v1407_v26 = vmul.f32 %v2201_v20, %v2894_v21  ;;  %v1560_v35 = vmul.f32 %v2201_v20, %v2900_v31  ;;  %v1730_v55 = vmul.f32 %v2201_v20, %v2929_v59 }
 0x16c   : > { %v2959_v37 = vadd.f32 %v812_v5, %v718_v34  ;;  %v849_v63 = vpop.f32.mrf.mxu0  ;;  %v1506_v34 = vmul.f32 %v2137_v3, %v2879_v9  ;;  %v1640_v44 = vmul.f32 %v1624_v56, %v1624_v56  ;;  %v2984_v5 = vld [vmem:[%s2886_s13 + $0x88] sm:$0xff]  }
 0x16d   : > { %v850_v46 = vadd.f32 %v849_v63, %v2800_v52  ;;  %v943_v40 = vpop.f32.mrf.mxu1  ;;  %v1745_v52 = vadd.f32 %v1729_v13, %v1710_v2  ;;  %v1423_v19 = vadd.f32 %v1407_v26, %v1355_v0  ;;  %v2138_v2 = vunpack.c.h.bf16 %v2323_v51 }
 0x16e   : > { %v2965_v10 = vadd.f32 %v943_v40, %v845_v11  ;;  %v2977_v11 = vadd.f32 %v1809_v47, %v1655_v49  ;;  %v1541_v18 = vadd.f32 %v1525_v45, %v1506_v34  ;;  %v1711_v47 = vadd.f32 %v1695_v32, %v1676_v38  ;;  %v2332_v38 = vld [vmem:[%s2850_s26 + $0x50] sm:$0xff]  }
 0x16f   : > { %1116 = vmatmul.f32.gmra.mxu2 %v2732_v50  ;;  %v1794_v13 = vsub.f32 %v1745_v52, %v2294_v29  ;;  %v1471_v63 = vsub.f32 %v1423_v19, %v2233_v8  ;;  %v1288_v56 = vmul.f32 %v2138_v2, %v2873_v1  ;;  %v2991_v26 = vadd.f32 %v1640_v44, %v1486_v42 }
 0x170   : > { %1194 = vmatmul.f32.gmra.mxu3 %v2716_v27  ;;  %v1576_v33 = vadd.f32 %v1560_v35, %v1541_v18  ;;  %v2170_v27 = vunpack.c.h.bf16 %v2331_v30  ;;  %v2297_v51 = vunpack.c.l.bf16 %v2984_v5  ;;  %v1408_v30 = vmul.f32 %v2202_v53, %v2894_v21 }
 0x171   : > { %v1507_v34 = vmul.f32 %v2138_v2, %v2879_v9  ;;  %v2998_v45 = vmul.f32 %v1794_v13, %v1794_v13  ;;  %v2234_v52 = vunpack.c.h.bf16 %v2346_v12  ;;  %v1561_v0 = vmul.f32 %v2202_v53, %v2900_v31  ;;  %v2340_v13 = vld [vmem:[%s2850_s26 + $0x90] sm:$0xff]  }
 0x172   : > { %v734_v25 = vpop.f32.mrf.mxu2  ;;  %v1625_v22 = vsub.f32 %v1576_v33, %v2265_v39  ;;  %v1340_v60 = vmul.f32 %v2170_v27, %v2876_v4  ;;  %v1487_v8 = vmul.f32 %v1471_v63, %v1471_v63  ;;  %v2324_v39 = vld [vmem:[%s2850_s26 + $0x10] sm:$0xff]   ;;  %v2266_v44 = vunpack.c.h.bf16 %v2972_v54 }
 0x173   : > { %v816_v49 = vpop.f32.mrf.mxu3  ;;  %v1696_v19 = vmul.f32 %v2170_v27, %v2917_v24  ;;  %v1731_v12 = vmul.f32 %v2202_v53, %v2929_v59 }
 0x174   : > { %v2986_v40 = vadd.f32 %v816_v49, %v726_v48  ;;  %v854_v3 = vpop.f32.mrf.mxu0  ;;  %v1746_v48 = vadd.f32 %v1730_v55, %v1711_v47  ;;  %v1356_v29 = vadd.f32 %v1340_v60, %v1288_v56  ;;  %v1641_v35 = vmul.f32 %v1625_v22, %v1625_v22 }
 0x175   : > { %v855_v62 = vadd.f32 %v854_v3, %v2809_v6  ;;  %v949_v20 = vpop.f32.mrf.mxu1  ;;  %v1526_v6 = vmul.f32 %v2170_v27, %v2897_v28  ;;  %v2141_v49 = vunpack.c.l.bf16 %v2324_v39  ;;  %v2298_v22 = vunpack.c.h.bf16 %v2984_v5 }
 0x176   : > { %v2995_v58 = vadd.f32 %v949_v20, %v850_v46  ;;  %v1424_v18 = vadd.f32 %v1408_v30, %v1356_v29  ;;  %v1677_v46 = vmul.f32 %v2138_v2, %v2914_v17  ;;  %v1795_v33 = vsub.f32 %v1746_v48, %v2297_v51 }
 0x177   : > { %v1542_v42 = vadd.f32 %v1526_v6, %v1507_v34  ;;  %v1289_v53 = vmul.f32 %v2141_v49, %v2873_v1  ;;  %v3025_v6 = vld [vmem:[%s2886_s13 + $0x50] sm:$0xff]  }
 0x178   : > { %1198 = vmatmul.f32.gmra.mxu3 %v2732_v50  ;;  %v1472_v55 = vsub.f32 %v1424_v18, %v2234_v52  ;;  %v2173_v50 = vunpack.c.l.bf16 %v2332_v38  ;;  %v1712_v3 = vadd.f32 %v1696_v19, %v1677_v46  ;;  %v3020_v52 = vld [vmem:[%s2886_s13 + $0x10] sm:$0xff]   ;;  %v1678_v19 = vmul.f32 %v2141_v49, %v2914_v17 }
 0x179   : > { %v1577_v2 = vadd.f32 %v1561_v0, %v1542_v42  ;;  %v2237_v46 = vunpack.c.l.bf16 %v3020_v52 }
 0x17a   : > { %v1057_v32 = vpop.f32.mrf.mxu2  ;;  %v1488_v56 = vmul.f32 %v1472_v55, %v1472_v55  ;;  %v1341_v60 = vmul.f32 %v2173_v50, %v2876_v4  ;;  %v1747_v48 = vadd.f32 %v1731_v12, %v1712_v3  ;;  %v1527_v5 = vmul.f32 %v2173_v50, %v2897_v28 }
 0x17b   : > { %v820_v63 = vpop.f32.mrf.mxu3  ;;  %v1058_v47 = vadd.f32 %v1057_v32, %v2965_v10  ;;  %v1626_v30 = vsub.f32 %v1577_v2, %v2266_v44  ;;  %v2205_v10 = vunpack.c.l.bf16 %v2340_v13  ;;  %v2269_v44 = vunpack.c.l.bf16 %v3025_v6 }
 0x17c   : > { %v3012_v54 = vadd.f32 %v820_v63, %v734_v25  ;;  %v859_v27 = vpop.f32.mrf.mxu0  ;;  %v1357_v34 = vadd.f32 %v1341_v60, %v1289_v53  ;;  %v1508_v25 = vmul.f32 %v2141_v49, %v2879_v9  ;;  %v1796_v18 = vsub.f32 %v1747_v48, %v2298_v22  ;;  %v3035_v53 = vld [vmem:[%s2886_s13 + $0x90] sm:$0xff]  }
 0x17d   : > { %v860_v20 = vadd.f32 %v859_v27, %v2823_v23  ;;  %v955_v51 = vpop.f32.mrf.mxu1  ;;  %v1642_v0 = vmul.f32 %v1626_v30, %v1626_v30  ;;  %v1409_v23 = vmul.f32 %v2205_v10, %v2894_v21  ;;  %v1657_v12 = vadd.f32 %v1641_v35, %v1487_v8 }
 0x17e   : > { %v3017_v29 = vadd.f32 %v955_v51, %v855_v62  ;;  %v1543_v42 = vadd.f32 %v1527_v5, %v1508_v25  ;;  %v1562_v62 = vmul.f32 %v2205_v10, %v2900_v31  ;;  %v1811_v32 = vmul.f32 %v1795_v33, %v1795_v33 }
 0x17f   : > { %v1425_v55 = vadd.f32 %v1409_v23, %v1357_v34  ;;  %v1697_v63 = vmul.f32 %v2173_v50, %v2917_v24  ;;  %v1658_v3 = vadd.f32 %v1642_v0, %v1488_v56  ;;  %v1732_v22 = vmul.f32 %v2205_v10, %v2929_v59 }
 0x180   : > { %v1578_v27 = vadd.f32 %v1562_v62, %v1543_v42  ;;  %v2142_v60 = vunpack.c.h.bf16 %v2324_v39  ;;  %v1812_v48 = vmul.f32 %v1796_v18, %v1796_v18  ;;  %v2174_v50 = vunpack.c.h.bf16 %v2332_v38 }
 0x181   : > { %v1473_v25 = vsub.f32 %v1425_v55, %v2237_v46  ;;  %v1713_v5 = vadd.f32 %v1697_v63, %v1678_v19  ;;  %v2301_v10 = vunpack.c.l.bf16 %v3035_v53  ;;  %v2206_v23 = vunpack.c.h.bf16 %v2340_v13 }
 0x182   : > { %v1061_v2 = vpop.f32.mrf.mxu2  ;;  %v1627_v35 = vsub.f32 %v1578_v27, %v2269_v44  ;;  %v1290_v33 = vmul.f32 %v2142_v60, %v2873_v1  ;;  %v3044_v18 = vadd.f32 %v1811_v32, %v1657_v12  ;;  %v3046_v46 = vadd.f32 %v1812_v48, %v1658_v3  ;;  %v3055_v32 = vld [vmem:[%s2850_s26 + $0x18] sm:$0xff]  }
 0x183   : > { %v1062_v51 = vadd.f32 %v1061_v2, %v2995_v58  ;;  %v1139_v30 = vpop.f32.mrf.mxu3  ;;  %v1748_v0 = vadd.f32 %v1732_v22, %v1713_v5  ;;  %v1826_v58 = vadd.f32 %v2998_v45, %v2991_v26  ;;  %v1489_v38 = vmul.f32 %v1473_v25, %v1473_v25  ;;  %v3061_v22 = vld [vmem:[%s2850_s26 + $0x58] sm:$0xff]  }
 0x184   : > { %v1140_v49 = vadd.f32 %v1139_v30, %v1058_v47  ;;  %v864_v8 = vpop.f32.mrf.mxu0  ;;  %v1342_v47 = vmul.f32 %v2174_v50, %v2876_v4  ;;  %v2456_v42 = vmov 0.0   ;;  %v1643_v62 = vmul.f32 %v1627_v35, %v1627_v35  ;;  %v3064_v30 = vld [vmem:[%s2850_s26 + $0x98] sm:$0xff]  }
 0x185   : > { %v865_v56 = vadd.f32 %v864_v8, %v2859_v41  ;;  %v961_v34 = vpop.f32.mrf.mxu1  ;;  %v1410_v41 = vmul.f32 %v2206_v23, %v2894_v21  ;;  %v1509_v44 = vmul.f32 %v2142_v60, %v2879_v9  ;;  %v1797_v19 = vsub.f32 %v1748_v0, %v2301_v10  ;;  %371 = vst [vmem:[%s366_s14] sm:$0x3] %v2456_v42 }
 0x186   : > { %vm1202_vm1 = vcmp.gt.f32.partialorder %v1140_v49, 0.9  ;;  %v962_v39 = vadd.f32 %v961_v34, %v860_v20  ;;  %v1358_v20 = vadd.f32 %v1342_v47, %v1290_v33  ;;  %v2238_v26 = vunpack.c.h.bf16 %v3020_v52 }
 0x187   : > { %v2048_v13 = vsel %vm1202_vm1, 1.0, %v2456_v42  ;;  %v1528_v45 = vmul.f32 %v2174_v50, %v2897_v28  ;;  %v1563_v12 = vmul.f32 %v2206_v23, %v2900_v31  ;;  %v1679_v2 = vmul.f32 %v2142_v60, %v2914_v17 }
 0x188   : > { %v1426_v63 = vadd.f32 %v1410_v41, %v1358_v20  ;;  %v1698_v3 = vmul.f32 %v2174_v50, %v2917_v24  ;;  %v1733_v27 = vmul.f32 %v2206_v23, %v2929_v59  ;;  %v1841_v52 = vmul.f32 %v2048_v13, %v2977_v11 }
 0x189   : > { %v1544_v5 = vadd.f32 %v1528_v45, %v1509_v44  ;;  %v2270_v49 = vunpack.c.h.bf16 %v3025_v6  ;;  %v1659_v60 = vadd.f32 %v1643_v62, %v1489_v38  ;;  %v2145_v50 = vunpack.c.l.bf16 %v3055_v32  ;;  %v3074_v6 = vld [vmem:[%s2886_s13 + $0x18] sm:$0xff]  }
 0x18a   : > { %v1065_v55 = vpop.f32.mrf.mxu2  ;;  %v1714_v33 = vadd.f32 %v1698_v3, %v1679_v2  ;;  %v1474_v0 = vsub.f32 %v1426_v63, %v2238_v26  ;;  %v2177_v23 = vunpack.c.l.bf16 %v3061_v22  ;;  %v2209_v11 = vunpack.c.l.bf16 %v3064_v30 }
 0x18b   : > { %v1066_v48 = vadd.f32 %v1065_v55, %v3017_v29  ;;  %v1143_v25 = vpop.f32.mrf.mxu3  ;;  %v1579_v10 = vadd.f32 %v1563_v12, %v1544_v5  ;;  %v2302_v41 = vunpack.c.h.bf16 %v3035_v53  ;;  %v1291_v62 = vmul.f32 %v2145_v50, %v2873_v1  ;;  %v3081_v55 = vld [vmem:[%s2886_s13 + $0x58] sm:$0xff]  }
 0x18c   : > { %v1144_v8 = vadd.f32 %v1143_v25, %v1062_v51  ;;  %v869_v35 = vpop.f32.mrf.mxu0  ;;  %v1749_v47 = vadd.f32 %v1733_v27, %v1714_v33  ;;  %v1343_v20 = vmul.f32 %v2177_v23, %v2876_v4  ;;  %v1813_v45 = vmul.f32 %v1797_v19, %v1797_v19 }
 0x18d   : > { %v967_v34 = vpop.f32.mrf.mxu1  ;;  %v1628_v38 = vsub.f32 %v1579_v10, %v2270_v49  ;;  %v1411_v12 = vmul.f32 %v2209_v11, %v2894_v21  ;;  %v2241_v53 = vunpack.c.l.bf16 %v3074_v6  ;;  %v1510_v2 = vmul.f32 %v2145_v50, %v2879_v9 }
 0x18e   : > { %vm1203_vm2 = vcmp.gt.f32.partialorder %v1144_v8, 0.9  ;;  %v968_v29 = vadd.f32 %v967_v34, %v865_v56  ;;  %v1490_v56 = vmul.f32 %v1474_v0, %v1474_v0  ;;  %v1359_v63 = vadd.f32 %v1343_v20, %v1291_v62 }
 0x18f   : > { %v2049_v51 = vsel %vm1203_vm2, 1.0, %v2456_v42  ;;  %v1798_v25 = vsub.f32 %v1749_v47, %v2302_v41  ;;  %v1529_v5 = vmul.f32 %v2177_v23, %v2897_v28  ;;  %v1644_v49 = vmul.f32 %v1628_v38, %v1628_v38 }
 0x190   : > { %v1842_v44 = vmul.f32 %v2049_v51, %v1826_v58  ;;  %v1881_v26 = vadd.f32 %v2049_v51, %v2048_v13  ;;  %v1564_v58 = vmul.f32 %v2209_v11, %v2900_v31  ;;  %v1427_v8 = vadd.f32 %v1411_v12, %v1359_v63 }
 0x191   : > { %v2273_v33 = vunpack.c.l.bf16 %v3081_v55  ;;  %v1545_v10 = vadd.f32 %v1529_v5, %v1510_v2  ;;  %v1680_v51 = vmul.f32 %v2145_v50, %v2914_v17  ;;  %v1699_v62 = vmul.f32 %v2177_v23, %v2917_v24 }
 0x192   : > { %v1857_v3 = vadd.f32 %v1842_v44, %v1841_v52  ;;  %v1069_v27 = vpop.f32.mrf.mxu2  ;;  %v3091_v52 = vld [vmem:[%s2886_s13 + $0x98] sm:$0xff]   ;;  %v870_v47 = vadd.f32 %v869_v35, %v2905_v57  ;;  %v3094_v20 = vadd.f32 %v1813_v45, %v1659_v60  ;;  %v1734_v38 = vmul.f32 %v2209_v11, %v2929_v59 }
 0x193   : > { %v1070_v13 = vadd.f32 %v1069_v27, %v962_v39  ;;  %v1147_v19 = vpop.f32.mrf.mxu3  ;;  %v1475_v39 = vsub.f32 %v1427_v8, %v2241_v53  ;;  %v1814_v44 = vmul.f32 %v1798_v25, %v1798_v25  ;;  %v1580_v12 = vadd.f32 %v1564_v58, %v1545_v10 }
 0x194   : > { %v1148_v34 = vadd.f32 %v1147_v19, %v1066_v48  ;;  %v874_v0 = vpop.f32.mrf.mxu0  ;;  %v1715_v48 = vadd.f32 %v1699_v62, %v1680_v51  ;;  %v1660_v2 = vadd.f32 %v1644_v49, %v1490_v56  ;;  %v2305_v50 = vunpack.c.l.bf16 %v3091_v52 }
 0x195   : > { %v973_v41 = vpop.f32.mrf.mxu1  ;;  %v2146_v23 = vunpack.c.h.bf16 %v3055_v32  ;;  %v1629_v35 = vsub.f32 %v1580_v12, %v2273_v33  ;;  %v1491_v45 = vmul.f32 %v1475_v39, %v1475_v39  ;;  %v2178_v11 = vunpack.c.h.bf16 %v3061_v22 }
 0x196   : > { %vm1204_vm3 = vcmp.gt.f32.partialorder %v1148_v34, 0.9  ;;  %v1750_v60 = vadd.f32 %v1734_v38, %v1715_v48  ;;  %v2210_v25 = vunpack.c.h.bf16 %v3064_v30  ;;  %v875_v34 = vadd.f32 %v874_v0, %v2943_v15 }
 0x197   : > { %v2050_v63 = vsel %vm1204_vm3, 1.0, %v2456_v42  ;;  %v1292_v53 = vmul.f32 %v2146_v23, %v2873_v1  ;;  %v1645_v19 = vmul.f32 %v1629_v35, %v1629_v35  ;;  %v1511_v49 = vmul.f32 %v2146_v23, %v2879_v9 }
 0x198   : > { %v1843_v27 = vmul.f32 %v2050_v63, %v3044_v18  ;;  %v1882_v57 = vadd.f32 %v2050_v63, %v1881_v26  ;;  %v1799_v56 = vsub.f32 %v1750_v60, %v2305_v50  ;;  %v1344_v18 = vmul.f32 %v2178_v11, %v2876_v4  ;;  %v2334_v50 = vld [vmem:[%s2850_s26 + $0x60] sm:$0xff]  }
 0x199   : > { %v1412_v26 = vmul.f32 %v2210_v25, %v2894_v21  ;;  %v1530_v33 = vmul.f32 %v2178_v11, %v2897_v28  ;;  %v3109_v30 = vadd.f32 %v1814_v44, %v1660_v2  ;;  %v2242_v62 = vunpack.c.h.bf16 %v3074_v6 }
 0x19a   : > { %v1858_v5 = vadd.f32 %v1857_v3, %v1843_v27  ;;  %v1073_v58 = vpop.f32.mrf.mxu2  ;;  %v1565_v3 = vmul.f32 %v2210_v25, %v2900_v31  ;;  %v2274_v38 = vunpack.c.h.bf16 %v3081_v55  ;;  %v1661_v12 = vadd.f32 %v1645_v19, %v1491_v45  ;;  %v2342_v27 = vld [vmem:[%s2850_s26 + $0xa0] sm:$0xff]  }
 0x19b   : > { %v1074_v8 = vadd.f32 %v1073_v58, %v968_v29  ;;  %v1151_v32 = vpop.f32.mrf.mxu3  ;;  %v1360_v29 = vadd.f32 %v1344_v18, %v1292_v53  ;;  %v1546_v39 = vadd.f32 %v1530_v33, %v1511_v49  ;;  %v1815_v48 = vmul.f32 %v1799_v56, %v1799_v56  ;;  %v3124_v18 = vld [vmem:[%s2886_s13 + $0x20] sm:$0xff]  }
 0x19c   : > { %v1152_v22 = vadd.f32 %v1151_v32, %v1070_v13  ;;  %v879_v10 = vpop.f32.mrf.mxu0  ;;  %v1681_v15 = vmul.f32 %v2146_v23, %v2914_v17  ;;  %v2326_v13 = vld [vmem:[%s2850_s26 + $0x20] sm:$0xff]   ;;  %v1700_v2 = vmul.f32 %v2178_v11, %v2917_v24  ;;  %v974_v35 = vadd.f32 %v973_v41, %v870_v47 }
 0x19d   : > { %v979_v51 = vpop.f32.mrf.mxu1  ;;  %v1428_v44 = vadd.f32 %v1412_v26, %v1360_v29  ;;  %v1581_v63 = vadd.f32 %v1565_v3, %v1546_v39  ;;  %v1735_v55 = vmul.f32 %v2210_v25, %v2929_v59  ;;  %v2149_v23 = vunpack.c.l.bf16 %v2326_v13 }
 0x19e   : > { %vm1205_vm4 = vcmp.gt.f32.partialorder %v1152_v22, 0.9  ;;  %v1716_v58 = vadd.f32 %v1700_v2, %v1681_v15  ;;  %v2306_v49 = vunpack.c.h.bf16 %v3091_v52  ;;  %v2181_v32 = vunpack.c.l.bf16 %v2334_v50  ;;  %v3133_v52 = vld [vmem:[%s2886_s13 + $0x60] sm:$0xff]  }
 0x19f   : > { %v2051_v0 = vsel %vm1205_vm4, 1.0, %v2456_v42  ;;  %v1476_v45 = vsub.f32 %v1428_v44, %v2242_v62  ;;  %v1630_v53 = vsub.f32 %v1581_v63, %v2274_v38  ;;  %v2213_v11 = vunpack.c.l.bf16 %v2342_v27 }
 0x1a0   : > { %v1844_v6 = vmul.f32 %v2051_v0, %v3046_v46  ;;  %v1883_v60 = vadd.f32 %v2051_v0, %v1882_v57  ;;  %v880_v47 = vadd.f32 %v879_v10, %v2798_v43  ;;  %v980_v41 = vadd.f32 %v979_v51, %v875_v34 }
 0x1a1   : > { %v3127_v57 = vadd.f32 %v1815_v48, %v1661_v12  ;;  %v1751_v25 = vadd.f32 %v1735_v55, %v1716_v58  ;;  %v1293_v22 = vmul.f32 %v2149_v23, %v2873_v1  ;;  %v1413_v3 = vmul.f32 %v2213_v11, %v2894_v21 }
 0x1a2   : > { %v1859_v19 = vadd.f32 %v1858_v5, %v1844_v6  ;;  %v1077_v56 = vpop.f32.mrf.mxu2  ;;  %v1345_v5 = vmul.f32 %v2181_v32, %v2876_v4  ;;  %v1492_v62 = vmul.f32 %v1476_v45, %v1476_v45  ;;  %v1646_v39 = vmul.f32 %v1630_v53, %v1630_v53 }
 0x1a3   : > { %v1155_v46 = vpop.f32.mrf.mxu3  ;;  %v2245_v43 = vunpack.c.l.bf16 %v3124_v18  ;;  %v1512_v34 = vmul.f32 %v2149_v23, %v2879_v9  ;;  %v1800_v10 = vsub.f32 %v1751_v25, %v2306_v49  ;;  %v1531_v51 = vmul.f32 %v2181_v32, %v2897_v28 }
 0x1a4   : > { %v1156_v26 = vadd.f32 %v1155_v46, %v1074_v8  ;;  %v884_v33 = vpop.f32.mrf.mxu0  ;;  %v1361_v8 = vadd.f32 %v1345_v5, %v1293_v22  ;;  %v1078_v38 = vadd.f32 %v1077_v56, %v974_v35  ;;  %v1566_v48 = vmul.f32 %v2213_v11, %v2900_v31  ;;  %v3147_v35 = vld [vmem:[%s2886_s13 + $0xa0] sm:$0xff]  }
 0x1a5   : > { %v985_v29 = vpop.f32.mrf.mxu1  ;;  %v2277_v15 = vunpack.c.l.bf16 %v3133_v52  ;;  %v1547_v2 = vadd.f32 %v1531_v51, %v1512_v34  ;;  %v885_v6 = vadd.f32 %v884_v33, %v2807_v61  ;;  %v1682_v55 = vmul.f32 %v2149_v23, %v2914_v17 }
 0x1a6   : > { %vm1206_vm5 = vcmp.gt.f32.partialorder %v1156_v26, 0.9  ;;  %v1429_v63 = vadd.f32 %v1413_v3, %v1361_v8  ;;  %v1701_v45 = vmul.f32 %v2181_v32, %v2917_v24  ;;  %v1736_v53 = vmul.f32 %v2213_v11, %v2929_v59 }
 0x1a7   : > { %v2052_v12 = vsel %vm1206_vm5, 1.0, %v2456_v42  ;;  %v1662_v49 = vadd.f32 %v1646_v39, %v1492_v62  ;;  %v1816_v46 = vmul.f32 %v1800_v10, %v1800_v10  ;;  %v1582_v25 = vadd.f32 %v1566_v48, %v1547_v2 }
 0x1a8   : > { %v1845_v0 = vmul.f32 %v2052_v12, %v3094_v20  ;;  %v1884_v44 = vadd.f32 %v2052_v12, %v1883_v60  ;;  %v1477_v20 = vsub.f32 %v1429_v63, %v2245_v43  ;;  %v1717_v60 = vadd.f32 %v1701_v45, %v1682_v55 }
 0x1a9   : > { %v2150_v22 = vunpack.c.h.bf16 %v2326_v13  ;;  %v2182_v5 = vunpack.c.h.bf16 %v2334_v50  ;;  %v1631_v33 = vsub.f32 %v1582_v25, %v2277_v15  ;;  %v2309_v23 = vunpack.c.l.bf16 %v3147_v35  ;;  %v3169_v25 = vld [vmem:[%s2850_s26 + $0x68] sm:$0xff]  }
 0x1aa   : > { %v1860_v58 = vadd.f32 %v1859_v19, %v1845_v0  ;;  %v1081_v56 = vpop.f32.mrf.mxu2  ;;  %v2214_v32 = vunpack.c.h.bf16 %v2342_v27  ;;  %v986_v34 = vadd.f32 %v985_v29, %v880_v47  ;;  %v1752_v8 = vadd.f32 %v1736_v53, %v1717_v60 }
 0x1ab   : > { %v1159_v26 = vpop.f32.mrf.mxu3  ;;  %v1294_v19 = vmul.f32 %v2150_v22, %v2873_v1  ;;  %v1346_v62 = vmul.f32 %v2182_v5, %v2876_v4  ;;  %v1082_v39 = vadd.f32 %v1081_v56, %v980_v41  ;;  %v3152_v10 = vadd.f32 %v1816_v46, %v1662_v49 }
 0x1ac   : > { %v1160_v3 = vadd.f32 %v1159_v26, %v1078_v38  ;;  %v889_v61 = vpop.f32.mrf.mxu0  ;;  %v1414_v13 = vmul.f32 %v2214_v32, %v2894_v21  ;;  %v1493_v43 = vmul.f32 %v1477_v20, %v1477_v20  ;;  %v1647_v51 = vmul.f32 %v1631_v33, %v1631_v33 }
 0x1ad   : > { %v991_v11 = vpop.f32.mrf.mxu1  ;;  %v1362_v38 = vadd.f32 %v1346_v62, %v1294_v19  ;;  %v1801_v29 = vsub.f32 %v1752_v8, %v2309_v23  ;;  %v1513_v12 = vmul.f32 %v2150_v22, %v2879_v9  ;;  %v2246_v41 = vunpack.c.h.bf16 %v3124_v18 }
 0x1ae   : > { %vm1207_vm6 = vcmp.gt.f32.partialorder %v1160_v3, 0.9  ;;  %v1532_v15 = vmul.f32 %v2182_v5, %v2897_v28  ;;  %v1567_v0 = vmul.f32 %v2214_v32, %v2900_v31  ;;  %v890_v2 = vadd.f32 %v889_v61, %v2819_v14  ;;  %v2343_v3 = vld [vmem:[%s2850_s26 + $0xa8] sm:$0xff]  }
 0x1af   : > { %v2053_v50 = vsel %vm1207_vm6, 1.0, %v2456_v42  ;;  %v1430_v48 = vadd.f32 %v1414_v13, %v1362_v38  ;;  %v1683_v45 = vmul.f32 %v2150_v22, %v2914_v17  ;;  %v992_v53 = vadd.f32 %v991_v11, %v885_v6 }
 0x1b0   : > { %v1846_v27 = vmul.f32 %v2053_v50, %v3109_v30  ;;  %v1885_v47 = vadd.f32 %v2053_v50, %v1884_v44  ;;  %v1702_v30 = vmul.f32 %v2182_v5, %v2917_v24  ;;  %v3165_v44 = vld [vmem:[%s2850_s26 + $0x28] sm:$0xff]   ;;  %v1663_v49 = vadd.f32 %v1647_v51, %v1493_v43 }
 0x1b1   : > { %v1548_v46 = vadd.f32 %v1532_v15, %v1513_v12  ;;  %v2278_v18 = vunpack.c.h.bf16 %v3133_v52  ;;  %v1817_v20 = vmul.f32 %v1801_v29, %v1801_v29  ;;  %v1737_v60 = vmul.f32 %v2214_v32, %v2929_v59  ;;  %v3183_v43 = vld [vmem:[%s2886_s13 + $0x28] sm:$0xff]  }
 0x1b2   : > { %v1861_v63 = vadd.f32 %v1860_v58, %v1846_v27  ;;  %v1085_v55 = vpop.f32.mrf.mxu2  ;;  %v1718_v14 = vadd.f32 %v1702_v30, %v1683_v45  ;;  %v1478_v61 = vsub.f32 %v1430_v48, %v2246_v41  ;;  %v2310_v6 = vunpack.c.h.bf16 %v3147_v35 }
 0x1b3   : > { %v1163_v56 = vpop.f32.mrf.mxu3  ;;  %v1583_v5 = vadd.f32 %v1567_v0, %v1548_v46  ;;  %v2153_v33 = vunpack.c.l.bf16 %v3165_v44  ;;  %v1086_v23 = vadd.f32 %v1085_v55, %v986_v34  ;;  %v2185_v11 = vunpack.c.l.bf16 %v3169_v25  ;;  %v3186_v34 = vld [vmem:[%s2886_s13 + $0x68] sm:$0xff]  }
 0x1b4   : > { %v1164_v26 = vadd.f32 %v1163_v56, %v1082_v39  ;;  %v894_v58 = vpop.f32.mrf.mxu0  ;;  %v1753_v52 = vadd.f32 %v1737_v60, %v1718_v14  ;;  %v2217_v62 = vunpack.c.l.bf16 %v2343_v3  ;;  %v3179_v50 = vadd.f32 %v1817_v20, %v1663_v49 }
 0x1b5   : > { %v997_v22 = vpop.f32.mrf.mxu1  ;;  %v1632_v19 = vsub.f32 %v1583_v5, %v2278_v18  ;;  %v1295_v32 = vmul.f32 %v2153_v33, %v2873_v1  ;;  %v1347_v35 = vmul.f32 %v2185_v11, %v2876_v4  ;;  %v1494_v51 = vmul.f32 %v1478_v61, %v1478_v61 }
 0x1b6   : > { %vm1208_vm7 = vcmp.gt.f32.partialorder %v1164_v26, 0.9  ;;  %v1802_v38 = vsub.f32 %v1753_v52, %v2310_v6  ;;  %v1415_v27 = vmul.f32 %v2217_v62, %v2894_v21  ;;  %v1514_v29 = vmul.f32 %v2153_v33, %v2879_v9 }
 0x1b7   : > { %v2054_v8 = vsel %vm1208_vm7, 1.0, %v2456_v42  ;;  %v1648_v41 = vmul.f32 %v1632_v19, %v1632_v19  ;;  %v1363_v15 = vadd.f32 %v1347_v35, %v1295_v32  ;;  %v2249_v55 = vunpack.c.l.bf16 %v3183_v43 }
 0x1b8   : > { %v1847_v39 = vmul.f32 %v2054_v8, %v3127_v57  ;;  %v1886_v13 = vadd.f32 %v2054_v8, %v1885_v47  ;;  %v1533_v57 = vmul.f32 %v2185_v11, %v2897_v28  ;;  %v895_v47 = vadd.f32 %v894_v58, %v2852_v7  ;;  %v3199_v58 = vld [vmem:[%s2886_s13 + $0xa8] sm:$0xff]  }
 0x1b9   : > { %v1568_v45 = vmul.f32 %v2217_v62, %v2900_v31  ;;  %v2281_v30 = vunpack.c.l.bf16 %v3186_v34  ;;  %v1431_v46 = vadd.f32 %v1415_v27, %v1363_v15  ;;  %v998_v26 = vadd.f32 %v997_v22, %v890_v2 }
 0x1ba   : > { %v1862_v12 = vadd.f32 %v1861_v63, %v1847_v39  ;;  %v1089_v48 = vpop.f32.mrf.mxu2  ;;  %v1549_v18 = vadd.f32 %v1533_v57, %v1514_v29  ;;  %v1684_v63 = vmul.f32 %v2153_v33, %v2914_v17  ;;  %v1818_v14 = vmul.f32 %v1802_v38, %v1802_v38 }
 0x1bb   : > { %v1167_v0 = vpop.f32.mrf.mxu3  ;;  %v1703_v60 = vmul.f32 %v2185_v11, %v2917_v24  ;;  %v1738_v7 = vmul.f32 %v2217_v62, %v2929_v59  ;;  %v1090_v61 = vadd.f32 %v1089_v48, %v992_v53  ;;  %v1664_v5 = vadd.f32 %v1648_v41, %v1494_v51 }
 0x1bc   : > { %v1168_v56 = vadd.f32 %v1167_v0, %v1086_v23  ;;  %v899_v49 = vpop.f32.mrf.mxu0  ;;  %v1584_v6 = vadd.f32 %v1568_v45, %v1549_v18  ;;  %v1479_v52 = vsub.f32 %v1431_v46, %v2249_v55  ;;  %v2154_v19 = vunpack.c.h.bf16 %v3165_v44  ;;  %v2328_v46 = vld [vmem:[%s2850_s26 + $0x30] sm:$0xff]  }
 0x1bd   : > { %v1003_v20 = vpop.f32.mrf.mxu1  ;;  %v1719_v8 = vadd.f32 %v1703_v60, %v1684_v63  ;;  %v2313_v11 = vunpack.c.l.bf16 %v3199_v58  ;;  %v2186_v53 = vunpack.c.h.bf16 %v3169_v25  ;;  %v2218_v39 = vunpack.c.h.bf16 %v2343_v3  ;;  %v2336_v60 = vld [vmem:[%s2850_s26 + $0x70] sm:$0xff]  }
 0x1be   : > { %vm1209_vm8 = vcmp.gt.f32.partialorder %v1168_v56, 0.9  ;;  %v1633_v33 = vsub.f32 %v1584_v6, %v2281_v30  ;;  %v1296_v62 = vmul.f32 %v2154_v19, %v2873_v1  ;;  %v900_v51 = vadd.f32 %v899_v49, %v2891_v16 }
 0x1bf   : > { %v2055_v23 = vsel %vm1209_vm8, 1.0, %v2456_v42  ;;  %v1754_v32 = vadd.f32 %v1738_v7, %v1719_v8  ;;  %v3208_v27 = vadd.f32 %v1818_v14, %v1664_v5  ;;  %v1515_v44 = vmul.f32 %v2154_v19, %v2879_v9 }
 0x1c0   : > { %v1848_v2 = vmul.f32 %v2055_v23, %v3152_v10  ;;  %v1887_v22 = vadd.f32 %v2055_v23, %v1886_v13  ;;  %v1495_v10 = vmul.f32 %v1479_v52, %v1479_v52  ;;  %v1649_v13 = vmul.f32 %v1633_v33, %v1633_v33 }
 0x1c1   : > { %v1348_v48 = vmul.f32 %v2186_v53, %v2876_v4  ;;  %v1416_v41 = vmul.f32 %v2218_v39, %v2894_v21  ;;  %v1004_v15 = vadd.f32 %v1003_v20, %v895_v47  ;;  %v1534_v3 = vmul.f32 %v2186_v53, %v2897_v28 }
 0x1c2   : > { %v1863_v35 = vadd.f32 %v1862_v12, %v1848_v2  ;;  %v1093_v38 = vpop.f32.mrf.mxu2  ;;  %v1569_v16 = vmul.f32 %v2218_v39, %v2900_v31  ;;  %v1803_v55 = vsub.f32 %v1754_v32, %v2313_v11  ;;  %v2250_v30 = vunpack.c.h.bf16 %v3183_v43 }
 0x1c3   : > { %v1171_v29 = vpop.f32.mrf.mxu3  ;;  %v1094_v12 = vadd.f32 %v1093_v38, %v998_v26  ;;  %v1364_v45 = vadd.f32 %v1348_v48, %v1296_v62  ;;  %v1550_v56 = vadd.f32 %v1534_v3, %v1515_v44  ;;  %v2282_v49 = vunpack.c.h.bf16 %v3186_v34  ;;  %v2344_v26 = vld [vmem:[%s2850_s26 + $0xb0] sm:$0xff]  }
 0x1c4   : > { %v1172_v57 = vadd.f32 %v1171_v29, %v1090_v61  ;;  %v904_v25 = vpop.f32.mrf.mxu0  ;;  %v1685_v47 = vmul.f32 %v2154_v19, %v2914_v17  ;;  %v1665_v63 = vadd.f32 %v1649_v13, %v1495_v10  ;;  %v1704_v14 = vmul.f32 %v2186_v53, %v2917_v24  ;;  %v3238_v3 = vld [vmem:[%s2886_s13 + $0x70] sm:$0xff]  }
 0x1c5   : > { %v1009_v0 = vpop.f32.mrf.mxu1  ;;  %v1432_v20 = vadd.f32 %v1416_v41, %v1364_v45  ;;  %v1585_v5 = vadd.f32 %v1569_v16, %v1550_v56  ;;  %v1739_v43 = vmul.f32 %v2218_v39, %v2929_v59  ;;  %v1819_v6 = vmul.f32 %v1803_v55, %v1803_v55  ;;  %v3231_v39 = vld [vmem:[%s2886_s13 + $0x30] sm:$0xff]  }
 0x1c6   : > { %vm1210_vm9 = vcmp.gt.f32.partialorder %v1172_v57, 0.9  ;;  %v1720_v23 = vadd.f32 %v1704_v14, %v1685_v47  ;;  %v2157_v52 = vunpack.c.l.bf16 %v2328_v46  ;;  %v2189_v33 = vunpack.c.l.bf16 %v2336_v60 }
 0x1c7   : > { %v2056_v18 = vsel %vm1210_vm9, 1.0, %v2456_v42  ;;  %v1480_v34 = vsub.f32 %v1432_v20, %v2250_v30  ;;  %v1634_v2 = vsub.f32 %v1585_v5, %v2282_v49  ;;  %v2221_v11 = vunpack.c.l.bf16 %v2344_v26  ;;  %v3248_v49 = vld [vmem:[%s2886_s13 + $0xb0] sm:$0xff]  }
 0x1c8   : > { %v1849_v7 = vmul.f32 %v2056_v18, %v3179_v50  ;;  %v1888_v61 = vadd.f32 %v2056_v18, %v1887_v22  ;;  %v905_v32 = vadd.f32 %v904_v25, %v2936_v36  ;;  %v3226_v62 = vadd.f32 %v1009_v0, %v900_v51 }
 0x1c9   : > { %v2314_v50 = vunpack.c.h.bf16 %v3199_v58  ;;  %v1297_v22 = vmul.f32 %v2157_v52, %v2873_v1  ;;  %v1755_v29 = vadd.f32 %v1739_v43, %v1720_v23  ;;  %v1417_v10 = vmul.f32 %v2221_v11, %v2894_v21 }
 0x1ca   : > { %v1864_v8 = vadd.f32 %v1863_v35, %v1849_v7  ;;  %v1097_v19 = vpop.f32.mrf.mxu2  ;;  %v1349_v35 = vmul.f32 %v2189_v33, %v2876_v4  ;;  %v1835_v36 = vadd.f32 %v1819_v6, %v1665_v63  ;;  %v1496_v51 = vmul.f32 %v1480_v34, %v1480_v34 }
 0x1cb   : > { %v1175_v53 = vpop.f32.mrf.mxu3  ;;  %v1098_v13 = vadd.f32 %v1097_v19, %v1004_v15  ;;  %v1516_v41 = vmul.f32 %v2157_v52, %v2879_v9  ;;  %v1650_v58 = vmul.f32 %v1634_v2, %v1634_v2  ;;  %v2253_v25 = vunpack.c.l.bf16 %v3231_v39 }
 0x1cc   : > { %v1176_v38 = vadd.f32 %v1175_v53, %v1094_v12  ;;  %v909_v44 = vpop.f32.mrf.mxu0  ;;  %v1365_v57 = vadd.f32 %v1349_v35, %v1297_v22  ;;  %v1535_v15 = vmul.f32 %v2189_v33, %v2897_v28  ;;  %v1570_v0 = vmul.f32 %v2221_v11, %v2900_v31 }
 0x1cd   : > { %v1015_v48 = vpop.f32.mrf.mxu1  ;;  %v3242_v12 = vadd.f32 %v909_v44, %v2959_v37  ;;  %v1804_v30 = vsub.f32 %v1755_v29, %v2314_v50  ;;  %v2285_v18 = vunpack.c.l.bf16 %v3238_v3  ;;  %v1686_v63 = vmul.f32 %v2157_v52, %v2914_v17 }
 0x1ce   : > { %vm1211_vm10 = vcmp.gt.f32.partialorder %v1176_v38, 0.9  ;;  %v1433_v56 = vadd.f32 %v1417_v10, %v1365_v57  ;;  %v1551_v47 = vadd.f32 %v1535_v15, %v1516_v41  ;;  %v1705_v20 = vmul.f32 %v2189_v33, %v2917_v24 }
 0x1cf   : > { %v2057_v16 = vsel %vm1211_vm10, 1.0, %v2456_v42  ;;  %v1016_v14 = vadd.f32 %v1015_v48, %v905_v32  ;;  %v1740_v43 = vmul.f32 %v2221_v11, %v2929_v59  ;;  %v2317_v34 = vunpack.c.l.bf16 %v3248_v49 }
 0x1d0   : > { %v1850_v55 = vmul.f32 %v2057_v16, %v3208_v27  ;;  %v1889_v45 = vadd.f32 %v2057_v16, %v1888_v61  ;;  %v1481_v5 = vsub.f32 %v1433_v56, %v2253_v25  ;;  %v1586_v27 = vadd.f32 %v1570_v0, %v1551_v47 }
 0x1d1   : > { %v1721_v61 = vadd.f32 %v1705_v20, %v1686_v63  ;;  %v2158_v23 = vunpack.c.h.bf16 %v2328_v46  ;;  %v1666_v2 = vadd.f32 %v1650_v58, %v1496_v51  ;;  %v2190_v53 = vunpack.c.h.bf16 %v2336_v60 }
 0x1d2   : > { %v1865_v37 = vadd.f32 %v1864_v8, %v1850_v55  ;;  %v1101_v7 = vpop.f32.mrf.mxu2  ;;  %v2222_v50 = vunpack.c.h.bf16 %v2344_v26  ;;  %v1820_v22 = vmul.f32 %v1804_v30, %v1804_v30  ;;  %v1635_v52 = vsub.f32 %v1586_v27, %v2285_v18  ;;  %v2337_v18 = vld [vmem:[%s2850_s26 + $0x78] sm:$0xff]  }
 0x1d3   : > { %v1179_v6 = vpop.f32.mrf.mxu3  ;;  %v1756_v38 = vadd.f32 %v1740_v43, %v1721_v61  ;;  %v1298_v8 = vmul.f32 %v2158_v23, %v2873_v1  ;;  %v1497_v32 = vmul.f32 %v1481_v5, %v1481_v5  ;;  %v1350_v11 = vmul.f32 %v2190_v53, %v2876_v4  ;;  %v2345_v27 = vld [vmem:[%s2850_s26 + $0xb8] sm:$0xff]  }
 0x1d4   : > { %v1180_v19 = vadd.f32 %v1179_v6, %v1098_v13  ;;  %v1418_v44 = vmul.f32 %v2222_v50, %v2894_v21  ;;  %v914_v35 = vpop.f32.mrf.mxu0  ;;  %v1651_v46 = vmul.f32 %v1635_v52, %v1635_v52  ;;  %v2254_v60 = vunpack.c.h.bf16 %v3231_v39 }
 0x1d5   : > { %v1021_v33 = vpop.f32.mrf.mxu1  ;;  %v1805_v10 = vsub.f32 %v1756_v38, %v2317_v34  ;;  %v1366_v48 = vadd.f32 %v1350_v11, %v1298_v8  ;;  %v1517_v51 = vmul.f32 %v2158_v23, %v2879_v9  ;;  %v1102_v41 = vadd.f32 %v1101_v7, %v3226_v62 }
 0x1d6   : > { %vm1212_vm11 = vcmp.gt.f32.partialorder %v1180_v19, 0.9  ;;  %v1836_v58 = vadd.f32 %v1820_v22, %v1666_v2  ;;  %v1536_v57 = vmul.f32 %v2190_v53, %v2897_v28  ;;  %v1571_v25 = vmul.f32 %v2222_v50, %v2900_v31 }
 0x1d7   : > { %v2058_v29 = vsel %vm1212_vm11, 1.0, %v2456_v42  ;;  %v915_v15 = vadd.f32 %v914_v35, %v2986_v40  ;;  %v1434_v55 = vadd.f32 %v1418_v44, %v1366_v48  ;;  %v1687_v39 = vmul.f32 %v2158_v23, %v2914_v17  ;;  %v3274_v23 = vld [vmem:[%s2886_s13 + $0x38] sm:$0xff]  }
 0x1d8   : > { %v1851_v26 = vmul.f32 %v2058_v29, %v1835_v36  ;;  %v1890_v13 = vadd.f32 %v2058_v29, %v1889_v45  ;;  %v2329_v36 = vld [vmem:[%s2850_s26 + $0x38] sm:$0xff]   ;;  %v1667_v30 = vadd.f32 %v1651_v46, %v1497_v32  ;;  %v1552_v56 = vadd.f32 %v1536_v57, %v1517_v51 }
 0x1d9   : > { %v2286_v47 = vunpack.c.h.bf16 %v3238_v3  ;;  %v1706_v62 = vmul.f32 %v2190_v53, %v2917_v24  ;;  %v1821_v20 = vmul.f32 %v1805_v10, %v1805_v10  ;;  %v1741_v40 = vmul.f32 %v2222_v50, %v2929_v59  ;;  %v3282_v29 = vld [vmem:[%s2886_s13 + $0x78] sm:$0xff]  }
 0x1da   : > { %v1866_v16 = vadd.f32 %v1865_v37, %v1851_v26  ;;  %v1105_v0 = vpop.f32.mrf.mxu2  ;;  %v1482_v37 = vsub.f32 %v1434_v55, %v2254_v60  ;;  %v1587_v7 = vadd.f32 %v1571_v25, %v1552_v56  ;;  %v2318_v43 = vunpack.c.h.bf16 %v3248_v49 }
 0x1db   : > { %v1183_v45 = vpop.f32.mrf.mxu3  ;;  %v1722_v5 = vadd.f32 %v1706_v62, %v1687_v39  ;;  %v2161_v6 = vunpack.c.l.bf16 %v2329_v36  ;;  %v1106_v61 = vadd.f32 %v1105_v0, %v1016_v14  ;;  %v2193_v3 = vunpack.c.l.bf16 %v2337_v18  ;;  %v3290_v39 = vld [vmem:[%s2886_s13 + $0xb8] sm:$0xff]  }
 0x1dc   : > { %v1184_v63 = vadd.f32 %v1183_v45, %v1102_v41  ;;  %v1498_v34 = vmul.f32 %v1482_v37, %v1482_v37  ;;  %v1636_v2 = vsub.f32 %v1587_v7, %v2286_v47  ;;  %v2225_v8 = vunpack.c.l.bf16 %v2345_v27 }
 0x1dd   : > { %v1757_v53 = vadd.f32 %v1741_v40, %v1722_v5  ;;  %v1299_v22 = vmul.f32 %v2161_v6, %v2873_v1  ;;  %v1027_v38 = vpop.f32.mrf.mxu1  ;;  %v1351_v49 = vmul.f32 %v2193_v3, %v2876_v4  ;;  %v2257_v11 = vunpack.c.l.bf16 %v3274_v23 }
 0x1de   : > { %vm1213_vm12 = vcmp.gt.f32.partialorder %v1184_v63, 0.9  ;;  %v1652_v32 = vmul.f32 %v1636_v2, %v1636_v2  ;;  %v1518_v44 = vmul.f32 %v2161_v6, %v2879_v9  ;;  %v1419_v10 = vmul.f32 %v2225_v8, %v2894_v21 }
 0x1df   : > { %v2059_v19 = vsel %vm1213_vm12, 1.0, %v2456_v42  ;;  %v1806_v14 = vsub.f32 %v1757_v53, %v2318_v43  ;;  %v1367_v46 = vadd.f32 %v1351_v49, %v1299_v22  ;;  %v1537_v60 = vmul.f32 %v2193_v3, %v2897_v28 }
 0x1e0   : > { %v1852_v50 = vmul.f32 %v2059_v19, %v1836_v58  ;;  %v1891_v52 = vadd.f32 %v2059_v19, %v1890_v13  ;;  %v1022_v26 = vadd.f32 %v1021_v33, %v3242_v12  ;;  %v1028_v13 = vadd.f32 %v1027_v38, %v915_v15 }
 0x1e1   : > { %v1837_v41 = vadd.f32 %v1821_v20, %v1667_v30  ;;  %v1572_v58 = vmul.f32 %v2225_v8, %v2900_v31  ;;  %v1435_v25 = vadd.f32 %v1419_v10, %v1367_v46  ;;  %v1553_v0 = vadd.f32 %v1537_v60, %v1518_v44 }
 0x1e2   : > { %v1867_v35 = vadd.f32 %v1866_v16, %v1852_v50  ;;  %v1109_v48 = vpop.f32.mrf.mxu2  ;;  %v2289_v55 = vunpack.c.l.bf16 %v3282_v29  ;;  %v1668_v16 = vadd.f32 %v1652_v32, %v1498_v34  ;;  %v1688_v45 = vmul.f32 %v2161_v6, %v2914_v17 }
 0x1e3   : > { %v1187_v51 = vpop.f32.mrf.mxu3  ;;  %v1707_v56 = vmul.f32 %v2193_v3, %v2917_v24  ;;  %v1742_v12 = vmul.f32 %v2225_v8, %v2929_v59  ;;  %v1822_v33 = vmul.f32 %v1806_v14, %v1806_v14  ;;  %v1483_v15 = vsub.f32 %v1435_v25, %v2257_v11 }
 0x1e4   : > { %v1188_v57 = vadd.f32 %v1187_v51, %v1106_v61  ;;  %v1588_v30 = vadd.f32 %v1572_v58, %v1553_v0  ;;  %v2321_v63 = vunpack.c.l.bf16 %v3290_v39  ;;  %v2162_v20 = vunpack.c.h.bf16 %v2329_v36 }
 0x1e5   : > { %v1723_v62 = vadd.f32 %v1707_v56, %v1688_v45  ;;  %v1499_v7 = vmul.f32 %v1483_v15, %v1483_v15  ;;  %v2194_v61 = vunpack.c.h.bf16 %v2337_v18  ;;  %v2226_v34 = vunpack.c.h.bf16 %v2345_v27  ;;  %v1033_v25 = vpop.f32.mrf.mxu1 }
 0x1e6   : > { %vm1214_vm13 = vcmp.gt.f32.partialorder %v1188_v57, 0.9  ;;  %v1637_v5 = vsub.f32 %v1588_v30, %v2289_v55  ;;  %v1300_v6 = vmul.f32 %v2162_v20, %v2873_v1  ;;  %v1110_v3 = vadd.f32 %v1109_v48, %v1022_v26 }
 0x1e7   : > { %v2060_v47 = vsel %vm1214_vm13, 1.0, %v2456_v42  ;;  %v1758_v43 = vadd.f32 %v1742_v12, %v1723_v62  ;;  %v1519_v53 = vmul.f32 %v2162_v20, %v2879_v9  ;;  %v1838_v50 = vadd.f32 %v1822_v33, %v1668_v16 }
 0x1e8   : > { %v1853_v37 = vmul.f32 %v2060_v47, %v1837_v41  ;;  %v1892_v40 = vadd.f32 %v2060_v47, %v1891_v52  ;;  %v1653_v2 = vmul.f32 %v1637_v5, %v1637_v5  ;;  %v1352_v49 = vmul.f32 %v2194_v61, %v2876_v4 }
 0x1e9   : > { %v1807_v38 = vsub.f32 %v1758_v43, %v2321_v63  ;;  %v1420_v36 = vmul.f32 %v2226_v34, %v2894_v21  ;;  %v2258_v8 = vunpack.c.h.bf16 %v3274_v23  ;;  %v1538_v32 = vmul.f32 %v2194_v61, %v2897_v28 }
 0x1ea   : > { %v1868_v19 = vadd.f32 %v1867_v35, %v1853_v37  ;;  %v1573_v1 = vmul.f32 %v2226_v34, %v2900_v31  ;;  %v1113_v18 = vpop.f32.mrf.mxu2  ;;  %v1669_v27 = vadd.f32 %v1653_v2, %v1499_v7  ;;  %v1368_v14 = vadd.f32 %v1352_v49, %v1300_v6 }
 0x1eb   : > { %v1191_v22 = vpop.f32.mrf.mxu3  ;;  %v2290_v11 = vunpack.c.h.bf16 %v3282_v29  ;;  %v1689_v9 = vmul.f32 %v2162_v20, %v2914_v17  ;;  %v1554_v44 = vadd.f32 %v1538_v32, %v1519_v53  ;;  %v1708_v4 = vmul.f32 %v2194_v61, %v2917_v24  ;;  %v919_v29 = vpop.f32.mrf.mxu0 }
 0x1ec   : > { %v1192_v52 = vadd.f32 %v1191_v22, %v1110_v3  ;;  %v1743_v21 = vmul.f32 %v2226_v34, %v2929_v59  ;;  %v1823_v23 = vmul.f32 %v1807_v38, %v1807_v38  ;;  %v1436_v46 = vadd.f32 %v1420_v36, %v1368_v14 }
 0x1ed   : > { %v2322_v28 = vunpack.c.h.bf16 %v3290_v39  ;;  %v1589_v60 = vadd.f32 %v1573_v1, %v1554_v44  ;;  %v1724_v26 = vadd.f32 %v1708_v4, %v1689_v9  ;;  %v1114_v51 = vadd.f32 %v1113_v18, %v1028_v13 }
 0x1ee   : > { %vm1215_vm14 = vcmp.gt.f32.partialorder %v1192_v52, 0.9  ;;  %v1484_v48 = vsub.f32 %v1436_v46, %v2258_v8  ;;  %v1839_v24 = vadd.f32 %v1823_v23, %v1669_v27  ;;  %v920_v45 = vadd.f32 %v919_v29, %v3012_v54 }
 0x1ef   : > { %v2061_v35 = vsel %vm1215_vm14, 1.0, %v2456_v42  ;;  %v1638_v17 = vsub.f32 %v1589_v60, %v2290_v11  ;;  %v1759_v41 = vadd.f32 %v1743_v21, %v1724_v26  ;;  %v372_v8 = vlaneseq }
 0x1f0   : > { %v1854_v31 = vmul.f32 %v2061_v35, %v1838_v50  ;;  %v1893_v10 = vadd.f32 %v2061_v35, %v1892_v40  ;;  %v1500_v0 = vmul.f32 %v1484_v48, %v1484_v48  ;;  %v1034_v39 = vadd.f32 %v1033_v25, %v920_v45 }
 0x1f1   : > { %v1654_v55 = vmul.f32 %v1638_v17, %v1638_v17  ;;  %v1808_v16 = vsub.f32 %v1759_v41, %v2322_v28  ;;  %v373_v32 = vshrl.u32 %v372_v8, 7 }
 0x1f2   : > { %v1869_v58 = vadd.f32 %v1868_v19, %v1854_v31  ;;  %v1117_v56 = vpop.f32.mrf.mxu2 }
 0x1f3   : > { %v1195_v57 = vpop.f32.mrf.mxu3  ;;  %v1670_v15 = vadd.f32 %v1654_v55, %v1500_v0  ;;  %v1824_v30 = vmul.f32 %v1808_v16, %v1808_v16  ;;  %v1118_v47 = vadd.f32 %v1117_v56, %v1034_v39  ;;  %vm374_vm1 = vcmp.eq.s32.totalorder %v373_v32, 0 }
 0x1f4   : > { %v1196_v59 = vadd.f32 %v1195_v57, %v1114_v51 }
 0x1f5   : > { %v1840_v37 = vadd.f32 %v1824_v30, %v1670_v15 }
 0x1f6   : > { %vm1216_vm15 = vcmp.gt.f32.partialorder %v1196_v59, 0.9 }
 0x1f7   : > { %v2062_v12 = vsel %vm1216_vm15, 1.0, %v2456_v42 }
 0x1f8   : > { %v1855_v33 = vmul.f32 %v2062_v12, %v1839_v24  ;;  %v1894_v13 = vadd.f32 %v2062_v12, %v1893_v10 }
 0x1fa   : > { %v1870_v62 = vadd.f32 %v1869_v58, %v1855_v33 }
 0x1fb   : > { %v1199_v63 = vpop.f32.mrf.mxu3 }
 0x1fc   : > { %v1200_v20 = vadd.f32 %v1199_v63, %v1118_v47 }
 0x1fe   : > { %vm1217_vm0 = vcmp.gt.f32.partialorder %v1200_v20, 0.9 }
 0x1ff   : > { %v2063_v40 = vsel %vm1217_vm0, 1.0, %v2456_v42  ;;  %v1908_v42 = vld [vmem:[%s366_s14] sm:$0x3] }
 0x200   : > { %v1856_v7 = vmul.f32 %v2063_v40, %v1840_v37  ;;  %v1895_v54 = vadd.f32 %v2063_v40, %v1894_v13 }
 0x202   : > { %v1871_v5 = vadd.f32 %v1870_v62, %v1856_v7 }
 0x204   : > { %1872 = vadd.xlane.f32.xlu0 %v1871_v5 }
 0x20c   : > { %1896 = vadd.xlane.f32.xlu0 %v1895_v54 }
 0x277   : > { %v1873_v43 = vpop.xlane.xlu0 %1872 }
 0x278   : > { %v1874_v6 = vrot.slane %v1873_v43, 4 }
 0x27a   : > { %v1875_v61 = vadd.f32 %v1874_v6, %v1873_v43 }
 0x27c   : > { %v1876_v34 = vrot.slane %v1875_v61, 2 }
 0x27e   : > { %v1877_v3 = vadd.f32 %v1876_v34, %v1875_v61 }
 0x27f   : > { %v1897_v19 = vpop.xlane.xlu0 %1896 }
 0x280   : > { %v1898_v2 = vrot.slane %v1897_v19, 4  ;;  %v1878_v53 = vrot.slane %v1877_v3, 1 }
 0x282   : > { %v1899_v22 = vadd.f32 %v1898_v2, %v1897_v19  ;;  %v1879_v50 = vadd.f32 %v1878_v53, %v1877_v3 }
 0x284   : > { %v1900_v38 = vrot.slane %v1899_v22, 2  ;;  %2372 = vpush %v1879_v50 }
 0x286   : > { %v1901_v49 = vadd.f32 %v1900_v38, %v1899_v22 }
 0x288   : > { %v1902_v36 = vrot.slane %v1901_v49, 1 }
 0x28a   : > { %v1903_v52 = vadd.f32 %v1902_v36, %v1901_v49 }
 0x28c   : > { %2374 = vpush %v1903_v52 }
 0x2b5   : > { %s2373_s8 = spop %2372 }
 0x2b6   : > { %v1905_v1 = vstv %s2373_s8 }
 0x2bd   : > { %s2375_s15 = spop %2374 }
 0x2be   : > { %v1906_v18 = vstv %s2375_s15 }
 0x2bf   : > { %v1907_v27 = vsel %vm374_vm1, %v1905_v1, %v1906_v18 }
 0x2c0   : > { %v1909_v14 = vadd.f32 %v1908_v42, %v1907_v27 }
 0x2c2   : > { %1910 = vst [vmem:[%s366_s14] sm:$0x3] %v1909_v14 }
 0x2c3 PF: > { %s17_s23 = sadd.s32 1, %s2453_s23   ;;  %s3334_s21 = smov %s2449_s22 }
 0x2c4   : > { %p14_p8 = scmp.ge.s32.totalorder %s17_s23, 4   ;;  %s3335_s22 = smov %s3337_s25 }
 0x2c6   :  { %16 = sbr.rel (!%p14_p8) target bundleno = 2 (0x2), region = 96 }
 0x2cb   :  { %1930 = vsyncpa [#allocation3], 1 }
 0x2cc   :  { %1932 = vsyncpa [#allocation3 + $0x1], 1 }

</bundles_post_ra>
